<compile_context>
chip_gen: v7x
topology: tpu7x:2x2x1
jax: 0.10.0
libtpu: 0.0.40
codegen_flags: <defaults>
</compile_context>

<pallas_src>
import math
import functools

import jax
import jax.numpy as jnp
import numpy as np
from jax.experimental import pallas as pl
from jax.experimental.pallas import tpu as pltpu  # noqa: F401  (TPU backend)


# ----------------------------- kernel helpers -------------------------------

def _layernorm(x, g, b, eps=1e-5):
    # x: (n, C) f32;  g, b: (1, C)
    mu = jnp.mean(x, axis=-1, keepdims=True)
    var = jnp.mean(jnp.square(x - mu), axis=-1, keepdims=True)
    return (x - mu) * jax.lax.rsqrt(var + eps) * g + b


# ------------------------------- the kernel ---------------------------------

def decoder_layer_kernel(
        # flattened sequence inputs (f32)
        queries_ref,   # (B*Nq, C)
        keys_ref,      # (B*Nk, C)
        qpe_ref,       # (B*Nq, C)
        kpe_ref,       # (B*Nk, C)
        # packed parameters (matmul weights are bf16 in the fast path)
        w_sa_qk_ref,   # (C, 2C)    [sa_wq * 1/sqrt(d) | sa_wk]   (fused LHS-sharing projections)
        b_sa_qk_ref,   # (1, 2C)    [sa_bq * 1/sqrt(d) | sa_bk]   (always f32)
        w_cc_ref,      # (6, C, C)  [sa_wv, sa_wo, ca_wq*scale, ca_wk, ca_wv, ca_wo]
        vec_ref,       # (13, 1, C) [sa_bv, sa_bo, ca_bq*scale, ca_bk, ca_bv, ca_bo,
                       #             n1_g, n1_b, n2_g, n2_b, n3_g, n3_b, ff_b2]  (f32)
        ff_w1_ref,     # (C, 4C)
        ff_b1_ref,     # (1, 4C)    (f32)
        ff_w2_ref,     # (4C, C)
        # output
        out_ref,       # (B*Nq, C)
        *, batch, num_heads, precise):
    mm = jnp.float32 if precise else jnp.bfloat16

    def cvt(t):
        return t.astype(mm)

    queries = queries_ref[...]
    keys = keys_ref[...]
    qpe = qpe_ref[...]
    kpe = kpe_ref[...]
    w_cc = w_cc_ref[...]     # already bf16 in the fast path (no per-use cast cost)
    vec = vec_ref[...]

    B = batch
    H = num_heads
    C = queries.shape[1]
    Nq = queries.shape[0] // B
    Nk = keys.shape[0] // B
    d = C // H

    def split_heads(x, n_tok):
        # (B*n_tok, C) -> (B*H, n_tok, d)
        x = x.reshape(B, n_tok, H, d)
        x = jnp.transpose(x, (0, 2, 1, 3))
        return x.reshape(B * H, n_tok, d)

    def attend(q_lin, k_lin, v_lin, wo, bo, n_q, n_k):
        # q_lin: (B*n_q, C) f32, scale already folded in;  k_lin/v_lin: (B*n_k, C) f32
        q = split_heads(q_lin, n_q)            # (B*H, n_q, d)
        k = split_heads(k_lin, n_k)            # (B*H, n_k, d)
        v = split_heads(v_lin, n_k)            # (B*H, n_k, d)

        # Batched scores over the fused (B*H) leading dim -- one dot_general,
        # no per-batch unroll, no transposes of k.
        s = jnp.einsum('bqd,bkd->bqk', cvt(q), cvt(k),
                       preferred_element_type=jnp.float32)       # (B*H, n_q, n_k)
        s = s - jnp.max(s, axis=-1, keepdims=True)
        p = jnp.exp(s)
        denom = jnp.sum(p, axis=-1, keepdims=True)
        if precise:
            p = p / denom
        else:
            p = p * pl.reciprocal(denom, approx=True)            # EUP slot

        o = jnp.einsum('bqk,bkd->bqd', cvt(p), cvt(v),
                       preferred_element_type=jnp.float32)       # (B*H, n_q, d)
        # Recombine heads to (B*n_q, C), then ONE full-width output projection.
        o = o.reshape(B, H, n_q, d)
        o = jnp.transpose(o, (0, 2, 1, 3)).reshape(B * n_q, C)
        return jnp.dot(cvt(o), cvt(wo),
                       preferred_element_type=jnp.float32) + bo  # (B*n_q, C)

    # --- self attention block ---------------------------------------------
    x1 = queries + qpe                     # Q and K input
    x1c = cvt(x1)                          # hoisted cast (used once below)
    qc = cvt(queries)                      # V input

    qk = jnp.dot(x1c, cvt(w_sa_qk_ref[...]),
                 preferred_element_type=jnp.float32) + b_sa_qk_ref[...]   # (B*Nq, 2C)
    q_sa = qk[:, :C]
    k_sa = qk[:, C:]
    v_sa = jnp.dot(qc, cvt(w_cc[0]),
                   preferred_element_type=jnp.float32) + vec[0]

    sa = attend(q_sa, k_sa, v_sa, w_cc[1], vec[1], Nq, Nq)
    sa = queries + sa
    sa_n = _layernorm(sa, vec[6], vec[7])

    # --- cross attention block ----------------------------------------------
    qxc = cvt(sa_n + qpe)                  # cross-attn Q input
    kxc = cvt(keys + kpe)                  # cross-attn K input
    kvc = cvt(keys)                        # cross-attn V input

    q_ca = jnp.dot(qxc, cvt(w_cc[2]), preferred_element_type=jnp.float32) + vec[2]
    k_ca = jnp.dot(kxc, cvt(w_cc[3]), preferred_element_type=jnp.float32) + vec[3]
    v_ca = jnp.dot(kvc, cvt(w_cc[4]), preferred_element_type=jnp.float32) + vec[4]

    ca = attend(q_ca, k_ca, v_ca, w_cc[5], vec[5], Nq, Nk)
    ca = queries + ca                      # residual uses ORIGINAL queries (matches the PyTorch module)
    ca_n = _layernorm(ca, vec[8], vec[9])

    # --- feed forward block: (B*Nq, C) @ (C, 4C) -> ReLU -> (4C, C) -----------
    h = jnp.dot(cvt(ca_n), cvt(ff_w1_ref[...]),
                preferred_element_type=jnp.float32) + ff_b1_ref[...]
    h = jnp.maximum(h, 0.0)
    y = jnp.dot(cvt(h), cvt(ff_w2_ref[...]),
                preferred_element_type=jnp.float32) + vec[12]
    y = y + ca_n
    y = _layernorm(y, vec[10], vec[11])

    out_ref[...] = y.astype(out_ref.dtype)


# ------------------------------ python wrapper -------------------------------

def _pack_params(params, C, H, precise):
    """Host-side packing: fused self-attn QK weights, 1/sqrt(d) scale folding
    (in f32, before any bf16 cast), parameter stacking, optional bf16 cast of
    matmul weights (bias / LayerNorm params stay f32)."""
    d = C // H
    scale = 1.0 / math.sqrt(d)

    w_sa_qk = jnp.concatenate([params["sa_wq"] * scale, params["sa_wk"]], axis=1)   # (C, 2C)
    b_sa_qk = jnp.concatenate([params["sa_bq"] * scale, params["sa_bk"]], axis=1)   # (1, 2C)

    w_cc = jnp.stack([
        params["sa_wv"], params["sa_wo"],
        params["ca_wq"] * scale, params["ca_wk"], params["ca_wv"], params["ca_wo"],
    ])                                                                                # (6, C, C)
    vec = jnp.stack([
        params["sa_bv"], params["sa_bo"],
        params["ca_bq"] * scale, params["ca_bk"], params["ca_bv"], params["ca_bo"],
        params["n1_g"], params["n1_b"],
        params["n2_g"], params["n2_b"],
        params["n3_g"], params["n3_b"],
        params["ff_b2"],
    ])                                                                                # (13, 1, C)

    ff_w1, ff_b1, ff_w2 = params["ff_w1"], params["ff_b1"], params["ff_w2"]
    if not precise:
        # bf16 matmul operands: ~3x MXU throughput on v6e/v7x (and the right
        # choice on v5e too -- f32 matmuls are multi-pass there) and half the
        # weight DMA bytes.  Accumulation/softmax/LayerNorm stay f32.
        w_sa_qk = w_sa_qk.astype(jnp.bfloat16)
        w_cc = w_cc.astype(jnp.bfloat16)
        ff_w1 = ff_w1.astype(jnp.bfloat16)
        ff_w2 = ff_w2.astype(jnp.bfloat16)
    return w_sa_qk, b_sa_qk, w_cc, vec, ff_w1, ff_b1, ff_w2


def cross_attention_decoder_layer(queries, keys, query_pe, key_pe, params,
                                  num_heads, precise=False):
    B, Nq, C = queries.shape
    _, Nk, _ = keys.shape
    assert C % num_heads == 0

    packed = _pack_params(params, C, num_heads, precise)

    kernel = functools.partial(decoder_layer_kernel, batch=B,
                               num_heads=num_heads, precise=precise)

    # Grid-free call: at these shapes every operand fits trivially in VMEM, so
    # the default whole-array BlockSpecs are correct and there is no per-step
    # pipeline overhead.  (For production Nk/C one would add a "parallel"
    # query-tile/batch grid axis and tile Nk -- see header comment.)
    out2d = pl.pallas_call(
        kernel,
        out_shape=jax.ShapeDtypeStruct((B * Nq, C), queries.dtype),
    )(
        queries.reshape(B * Nq, C),
        keys.reshape(B * Nk, C),
        query_pe.reshape(B * Nq, C),
        key_pe.reshape(B * Nk, C),
        *packed,
    )
    return out2d.reshape(B, Nq, C)


# --------------------------- deterministic init -------------------------------

def init_params(key, hidden):
    ks = jax.random.split(key, 20)
    scale = 0.05

    def lin(k, fan_in, fan_out):
        return scale * jax.random.normal(k, (fan_in, fan_out), jnp.float32)

    def bias(k, fan_out):
        return scale * jax.random.normal(k, (1, fan_out), jnp.float32)

    p = {}
    i = 0
    for wn, bn in (("sa_wq", "sa_bq"), ("sa_wk", "sa_bk"), ("sa_wv", "sa_bv"),
                   ("sa_wo", "sa_bo"), ("ca_wq", "ca_bq"), ("ca_wk", "ca_bk"),
                   ("ca_wv", "ca_bv"), ("ca_wo", "ca_bo")):
        p[wn] = lin(ks[i], hidden, hidden); i += 1
        p[bn] = bias(ks[i], hidden); i += 1
    # feed-forward: hidden -> 4*hidden -> hidden
    p["ff_w1"] = lin(ks[i], hidden, 4 * hidden); i += 1
    p["ff_b1"] = bias(ks[i], 4 * hidden); i += 1
    p["ff_w2"] = lin(ks[i], 4 * hidden, hidden); i += 1
    p["ff_b2"] = bias(ks[i], hidden); i += 1
    # layernorms (PyTorch default: weight=1, bias=0, eps=1e-5)
    for n in ("n1", "n2", "n3"):
        p[f"{n}_g"] = jnp.ones((1, hidden), jnp.float32)
        p[f"{n}_b"] = jnp.zeros((1, hidden), jnp.float32)
    return p


# ----------------------------- pure-JAX reference ----------------------------

def _ref_attention(q_in, k_in, v_in, wq, bq, wk, bk, wv, bv, wo, bo, num_heads):
    def split(x):
        b, n, c = x.shape
        return x.reshape(b, n, num_heads, c // num_heads).transpose(0, 2, 1, 3)

    q = split(q_in @ wq + bq)
    k = split(k_in @ wk + bk)
    v = split(v_in @ wv + bv)
    d = q.shape[-1]
    attn = jnp.einsum("bhqd,bhkd->bhqk", q, k) / math.sqrt(d)
    attn = jax.nn.softmax(attn, axis=-1)
    out = jnp.einsum("bhqk,bhkd->bhqd", attn, v)
    b, h, n, d = out.shape
    out = out.transpose(0, 2, 1, 3).reshape(b, n, h * d)
    return out @ wo + bo


def ref_forward(queries, keys, query_pe, key_pe, p, num_heads):
    def ln(x, g, b):
        mu = jnp.mean(x, -1, keepdims=True)
        var = jnp.mean((x - mu) ** 2, -1, keepdims=True)
        return (x - mu) / jnp.sqrt(var + 1e-5) * g + b

    q = queries + query_pe
    sa = _ref_attention(q, q, queries, p["sa_wq"], p["sa_bq"], p["sa_wk"],
                        p["sa_bk"], p["sa_wv"], p["sa_bv"], p["sa_wo"],
                        p["sa_bo"], num_heads)
    sa = queries + sa
    sa_n = ln(sa, p["n1_g"], p["n1_b"])
    q = sa_n + query_pe
    k = keys + key_pe
    ca = _ref_attention(q, k, keys, p["ca_wq"], p["ca_bq"], p["ca_wk"],
                        p["ca_bk"], p["ca_wv"], p["ca_bv"], p["ca_wo"],
                        p["ca_bo"], num_heads)
    ca = queries + ca
    ca_n = ln(ca, p["n2_g"], p["n2_b"])
    mlp = jnp.maximum(ca_n @ p["ff_w1"] + p["ff_b1"], 0.0) @ p["ff_w2"] + p["ff_b2"]
    mlp = mlp + ca_n
    return ln(mlp, p["n3_g"], p["n3_b"])


# ----------------------------------- main ------------------------------------

if __name__ == "__main__":
    B, Nq, Nk, C, H = 2, 8, 16, 32, 4

    key = jax.random.PRNGKey(0)
    k0, k1, k2, k3, kp = jax.random.split(key, 5)
    queries = jax.random.normal(k0, (B, Nq, C), jnp.float32)
    keys = jax.random.normal(k1, (B, Nk, C), jnp.float32)
    query_pe = jax.random.normal(k2, (B, Nq, C), jnp.float32)
    key_pe = jax.random.normal(k3, (B, Nk, C), jnp.float32)

    params = init_params(kp, C)
    ref = ref_forward(queries, keys, query_pe, key_pe, params, num_heads=H)

    # precise path: f32 matmuls + exact softmax division (tight correctness check)
    out_f32 = cross_attention_decoder_layer(queries, keys, query_pe, key_pe,
                                            params, num_heads=H, precise=True)
    out_f32 = jax.block_until_ready(out_f32)
    np.testing.assert_allclose(np.asarray(out_f32), np.asarray(ref),
                               atol=1e-4, rtol=1e-4)

    # fast path (default): bf16 matmul operands (f32 accumulation) +
    # approx-reciprocal softmax normalization -> looser tolerance.
    out_bf16 = cross_attention_decoder_layer(queries, keys, query_pe, key_pe,
                                             params, num_heads=H, precise=False)
    out_bf16 = jax.block_until_ready(out_bf16)
    np.testing.assert_allclose(np.asarray(out_bf16), np.asarray(ref),
                               atol=5e-2, rtol=5e-2)

    print("KERNEL_OK")
</pallas_src>

<mosaic_0001>
module attributes {stable_mosaic.version = 11 : i64} {
  func.func @decoder_layer_kernel(%arg0: memref<16x32xf32, #tpu.memory_space<vmem>>, %arg1: memref<32x32xf32, #tpu.memory_space<vmem>>, %arg2: memref<16x32xf32, #tpu.memory_space<vmem>>, %arg3: memref<32x32xf32, #tpu.memory_space<vmem>>, %arg4: memref<32x64xf32, #tpu.memory_space<vmem>>, %arg5: memref<1x64xf32, #tpu.memory_space<vmem>>, %arg6: memref<6x32x32xf32, #tpu.memory_space<vmem>>, %arg7: memref<13x1x32xf32, #tpu.memory_space<vmem>>, %arg8: memref<32x128xf32, #tpu.memory_space<vmem>>, %arg9: memref<1x128xf32, #tpu.memory_space<vmem>>, %arg10: memref<128x32xf32, #tpu.memory_space<vmem>>, %arg11: memref<16x32xf32, #tpu.memory_space<vmem>>) attributes {dimension_semantics = [], scalar_prefetch = 0 : i64, scratch_operands = 0 : i64, tpu.core_type = #tpu.core_type<tc>} {
    %c0 = arith.constant 0 : index
    %c0_0 = arith.constant 0 : index
    %0 = vector.load %arg0[%c0, %c0_0] : memref<16x32xf32, #tpu.memory_space<vmem>>, vector<16x32xf32>
    %c0_1 = arith.constant 0 : index
    %c0_2 = arith.constant 0 : index
    %1 = vector.load %arg1[%c0_1, %c0_2] : memref<32x32xf32, #tpu.memory_space<vmem>>, vector<32x32xf32>
    %c0_3 = arith.constant 0 : index
    %c0_4 = arith.constant 0 : index
    %2 = vector.load %arg2[%c0_3, %c0_4] : memref<16x32xf32, #tpu.memory_space<vmem>>, vector<16x32xf32>
    %c0_5 = arith.constant 0 : index
    %c0_6 = arith.constant 0 : index
    %3 = vector.load %arg3[%c0_5, %c0_6] : memref<32x32xf32, #tpu.memory_space<vmem>>, vector<32x32xf32>
    %c0_7 = arith.constant 0 : index
    %c0_8 = arith.constant 0 : index
    %c0_9 = arith.constant 0 : index
    %4 = vector.load %arg6[%c0_7, %c0_8, %c0_9] : memref<6x32x32xf32, #tpu.memory_space<vmem>>, vector<6x32x32xf32>
    %c0_10 = arith.constant 0 : index
    %c0_11 = arith.constant 0 : index
    %c0_12 = arith.constant 0 : index
    %5 = vector.load %arg7[%c0_10, %c0_11, %c0_12] : memref<13x1x32xf32, #tpu.memory_space<vmem>>, vector<13x1x32xf32>
    %6 = arith.addf %0, %2 : vector<16x32xf32>
    %c0_13 = arith.constant 0 : index
    %c0_14 = arith.constant 0 : index
    %7 = vector.load %arg4[%c0_13, %c0_14] : memref<32x64xf32, #tpu.memory_space<vmem>>, vector<32x64xf32>
    %cst = arith.constant dense<0.000000e+00> : vector<16x64xf32>
    %8 = tpu.matmul %6, %7, %cst {dimension_numbers = #tpu.dot_dimension_numbers<[1], [0], [0], [1], [0, 0, 1, 1], [], []>} : vector<16x32xf32>, vector<32x64xf32>, vector<16x64xf32> -> vector<16x64xf32>
    %c0_15 = arith.constant 0 : index
    %c0_16 = arith.constant 0 : index
    %9 = vector.load %arg5[%c0_15, %c0_16] : memref<1x64xf32, #tpu.memory_space<vmem>>, vector<1x64xf32>
    %10 = vector.broadcast %9 : vector<1x64xf32> to vector<16x64xf32>
    %11 = arith.addf %8, %10 : vector<16x64xf32>
    %12 = vector.extract_strided_slice %11 {offsets = [0, 0], sizes = [16, 32], strides = [1, 1]} : vector<16x64xf32> to vector<16x32xf32>
    %13 = vector.extract_strided_slice %11 {offsets = [0, 32], sizes = [16, 32], strides = [1, 1]} : vector<16x64xf32> to vector<16x32xf32>
    %14 = vector.extract_strided_slice %4 {offsets = [0, 0, 0], sizes = [1, 32, 32], strides = [1, 1, 1]} : vector<6x32x32xf32> to vector<1x32x32xf32>
    %15 = vector.shape_cast %14 : vector<1x32x32xf32> to vector<32x32xf32>
    %cst_17 = arith.constant dense<0.000000e+00> : vector<16x32xf32>
    %16 = tpu.matmul %0, %15, %cst_17 {dimension_numbers = #tpu.dot_dimension_numbers<[1], [0], [0], [1], [0, 0, 1, 1], [], []>} : vector<16x32xf32>, vector<32x32xf32>, vector<16x32xf32> -> vector<16x32xf32>
    %17 = vector.extract_strided_slice %5 {offsets = [0, 0, 0], sizes = [1, 1, 32], strides = [1, 1, 1]} : vector<13x1x32xf32> to vector<1x1x32xf32>
    %18 = vector.shape_cast %17 : vector<1x1x32xf32> to vector<1x32xf32>
    %19 = vector.broadcast %18 : vector<1x32xf32> to vector<16x32xf32>
    %20 = arith.addf %16, %19 : vector<16x32xf32>
    %21 = vector.extract_strided_slice %4 {offsets = [1, 0, 0], sizes = [1, 32, 32], strides = [1, 1, 1]} : vector<6x32x32xf32> to vector<1x32x32xf32>
    %22 = vector.shape_cast %21 : vector<1x32x32xf32> to vector<32x32xf32>
    %23 = vector.extract_strided_slice %5 {offsets = [1, 0, 0], sizes = [1, 1, 32], strides = [1, 1, 1]} : vector<13x1x32xf32> to vector<1x1x32xf32>
    %24 = vector.shape_cast %23 : vector<1x1x32xf32> to vector<1x32xf32>
    %25 = vector.shape_cast %12 : vector<16x32xf32> to vector<2x8x4x8xf32>
    %26 = tpu.transpose %25, [0, 2, 1, 3] : vector<2x8x4x8xf32> -> vector<2x4x8x8xf32>
    %27 = vector.shape_cast %26 : vector<2x4x8x8xf32> to vector<8x8x8xf32>
    %28 = vector.shape_cast %13 : vector<16x32xf32> to vector<2x8x4x8xf32>
    %29 = tpu.transpose %28, [0, 2, 1, 3] : vector<2x8x4x8xf32> -> vector<2x4x8x8xf32>
    %30 = vector.shape_cast %29 : vector<2x4x8x8xf32> to vector<8x8x8xf32>
    %31 = vector.shape_cast %20 : vector<16x32xf32> to vector<2x8x4x8xf32>
    %32 = tpu.transpose %31, [0, 2, 1, 3] : vector<2x8x4x8xf32> -> vector<2x4x8x8xf32>
    %33 = vector.shape_cast %32 : vector<2x4x8x8xf32> to vector<8x8x8xf32>
    "tpu.trace_start"() <{level = 10 : i32, message = "bqd,bkd->bqk"}> : () -> ()
    %cst_18 = arith.constant dense<0.000000e+00> : vector<8x8x8xf32>
    %34 = tpu.matmul %27, %30, %cst_18 {dimension_numbers = #tpu.dot_dimension_numbers<[2], [2], [1], [1], [0, 0, 0, 1, 1, 1], [0], [0]>} : vector<8x8x8xf32>, vector<8x8x8xf32>, vector<8x8x8xf32> -> vector<8x8x8xf32>
    "tpu.trace_stop"() : () -> ()
    %cst_19 = arith.constant dense<0xFF800000> : vector<8x8xf32>
    %35 = vector.multi_reduction <maximumf>, %34, %cst_19 [2] : vector<8x8x8xf32> to vector<8x8xf32>
    %36 = vector.shape_cast %35 : vector<8x8xf32> to vector<8x8x1xf32>
    %37 = vector.broadcast %36 : vector<8x8x1xf32> to vector<8x8x8xf32>
    %38 = arith.subf %34, %37 : vector<8x8x8xf32>
    %39 = math.exp %38 : vector<8x8x8xf32>
    %cst_20 = arith.constant dense<0.000000e+00> : vector<8x8xf32>
    %40 = vector.multi_reduction <add>, %39, %cst_20 [2] : vector<8x8x8xf32> to vector<8x8xf32>
    %41 = vector.shape_cast %40 : vector<8x8xf32> to vector<8x8x1xf32>
    %42 = vector.broadcast %41 : vector<8x8x1xf32> to vector<8x8x8xf32>
    %43 = arith.divf %39, %42 : vector<8x8x8xf32>
    "tpu.trace_start"() <{level = 10 : i32, message = "bqk,bkd->bqd"}> : () -> ()
    %cst_21 = arith.constant dense<0.000000e+00> : vector<8x8x8xf32>
    %44 = tpu.matmul %43, %33, %cst_21 {dimension_numbers = #tpu.dot_dimension_numbers<[2], [1], [1], [2], [0, 0, 0, 1, 1, 2], [0], [0]>} : vector<8x8x8xf32>, vector<8x8x8xf32>, vector<8x8x8xf32> -> vector<8x8x8xf32>
    "tpu.trace_stop"() : () -> ()
    %45 = vector.shape_cast %44 : vector<8x8x8xf32> to vector<2x4x8x8xf32>
    %46 = tpu.transpose %45, [0, 2, 1, 3] : vector<2x4x8x8xf32> -> vector<2x8x4x8xf32>
    %47 = vector.shape_cast %46 : vector<2x8x4x8xf32> to vector<16x32xf32>
    %cst_22 = arith.constant dense<0.000000e+00> : vector<16x32xf32>
    %48 = tpu.matmul %47, %22, %cst_22 {dimension_numbers = #tpu.dot_dimension_numbers<[1], [0], [0], [1], [0, 0, 1, 1], [], []>} : vector<16x32xf32>, vector<32x32xf32>, vector<16x32xf32> -> vector<16x32xf32>
    %49 = vector.broadcast %24 : vector<1x32xf32> to vector<16x32xf32>
    %50 = arith.addf %48, %49 : vector<16x32xf32>
    %51 = arith.addf %0, %50 : vector<16x32xf32>
    %52 = vector.extract_strided_slice %5 {offsets = [6, 0, 0], sizes = [1, 1, 32], strides = [1, 1, 1]} : vector<13x1x32xf32> to vector<1x1x32xf32>
    %53 = vector.shape_cast %52 : vector<1x1x32xf32> to vector<1x32xf32>
    %54 = vector.extract_strided_slice %5 {offsets = [7, 0, 0], sizes = [1, 1, 32], strides = [1, 1, 1]} : vector<13x1x32xf32> to vector<1x1x32xf32>
    %55 = vector.shape_cast %54 : vector<1x1x32xf32> to vector<1x32xf32>
    %cst_23 = arith.constant dense<0.000000e+00> : vector<16xf32>
    %56 = vector.multi_reduction <add>, %51, %cst_23 [1] : vector<16x32xf32> to vector<16xf32>
    %57 = vector.shape_cast %56 : vector<16xf32> to vector<16x1xf32>
    %cst_24 = arith.constant 3.200000e+01 : f32
    %58 = vector.broadcast %cst_24 : f32 to vector<16x1xf32>
    %59 = arith.divf %57, %58 : vector<16x1xf32>
    %60 = vector.broadcast %59 : vector<16x1xf32> to vector<16x32xf32>
    %61 = arith.subf %51, %60 : vector<16x32xf32>
    %62 = arith.mulf %61, %61 : vector<16x32xf32>
    %cst_25 = arith.constant dense<0.000000e+00> : vector<16xf32>
    %63 = vector.multi_reduction <add>, %62, %cst_25 [1] : vector<16x32xf32> to vector<16xf32>
    %64 = vector.shape_cast %63 : vector<16xf32> to vector<16x1xf32>
    %cst_26 = arith.constant 3.200000e+01 : f32
    %65 = vector.broadcast %cst_26 : f32 to vector<16x1xf32>
    %66 = arith.divf %64, %65 : vector<16x1xf32>
    %67 = vector.broadcast %59 : vector<16x1xf32> to vector<16x32xf32>
    %68 = arith.subf %51, %67 : vector<16x32xf32>
    %cst_27 = arith.constant 9.99999974E-6 : f32
    %69 = vector.broadcast %cst_27 : f32 to vector<16x1xf32>
    %70 = arith.addf %66, %69 : vector<16x1xf32>
    %71 = math.rsqrt %70 : vector<16x1xf32>
    %72 = vector.broadcast %71 : vector<16x1xf32> to vector<16x32xf32>
    %73 = arith.mulf %68, %72 : vector<16x32xf32>
    %74 = vector.broadcast %53 : vector<1x32xf32> to vector<16x32xf32>
    %75 = arith.mulf %73, %74 : vector<16x32xf32>
    %76 = vector.broadcast %55 : vector<1x32xf32> to vector<16x32xf32>
    %77 = arith.addf %75, %76 : vector<16x32xf32>
    %78 = arith.addf %77, %2 : vector<16x32xf32>
    %79 = arith.addf %1, %3 : vector<32x32xf32>
    %80 = vector.extract_strided_slice %4 {offsets = [2, 0, 0], sizes = [1, 32, 32], strides = [1, 1, 1]} : vector<6x32x32xf32> to vector<1x32x32xf32>
    %81 = vector.shape_cast %80 : vector<1x32x32xf32> to vector<32x32xf32>
    %cst_28 = arith.constant dense<0.000000e+00> : vector<16x32xf32>
    %82 = tpu.matmul %78, %81, %cst_28 {dimension_numbers = #tpu.dot_dimension_numbers<[1], [0], [0], [1], [0, 0, 1, 1], [], []>} : vector<16x32xf32>, vector<32x32xf32>, vector<16x32xf32> -> vector<16x32xf32>
    %83 = vector.extract_strided_slice %5 {offsets = [2, 0, 0], sizes = [1, 1, 32], strides = [1, 1, 1]} : vector<13x1x32xf32> to vector<1x1x32xf32>
    %84 = vector.shape_cast %83 : vector<1x1x32xf32> to vector<1x32xf32>
    %85 = vector.broadcast %84 : vector<1x32xf32> to vector<16x32xf32>
    %86 = arith.addf %82, %85 : vector<16x32xf32>
    %87 = vector.extract_strided_slice %4 {offsets = [3, 0, 0], sizes = [1, 32, 32], strides = [1, 1, 1]} : vector<6x32x32xf32> to vector<1x32x32xf32>
    %88 = vector.shape_cast %87 : vector<1x32x32xf32> to vector<32x32xf32>
    %cst_29 = arith.constant dense<0.000000e+00> : vector<32x32xf32>
    %89 = tpu.matmul %79, %88, %cst_29 {dimension_numbers = #tpu.dot_dimension_numbers<[1], [0], [0], [1], [0, 0, 1, 1], [], []>} : vector<32x32xf32>, vector<32x32xf32>, vector<32x32xf32> -> vector<32x32xf32>
    %90 = vector.extract_strided_slice %5 {offsets = [3, 0, 0], sizes = [1, 1, 32], strides = [1, 1, 1]} : vector<13x1x32xf32> to vector<1x1x32xf32>
    %91 = vector.shape_cast %90 : vector<1x1x32xf32> to vector<1x32xf32>
    %92 = vector.broadcast %91 : vector<1x32xf32> to vector<32x32xf32>
    %93 = arith.addf %89, %92 : vector<32x32xf32>
    %94 = vector.extract_strided_slice %4 {offsets = [4, 0, 0], sizes = [1, 32, 32], strides = [1, 1, 1]} : vector<6x32x32xf32> to vector<1x32x32xf32>
    %95 = vector.shape_cast %94 : vector<1x32x32xf32> to vector<32x32xf32>
    %cst_30 = arith.constant dense<0.000000e+00> : vector<32x32xf32>
    %96 = tpu.matmul %1, %95, %cst_30 {dimension_numbers = #tpu.dot_dimension_numbers<[1], [0], [0], [1], [0, 0, 1, 1], [], []>} : vector<32x32xf32>, vector<32x32xf32>, vector<32x32xf32> -> vector<32x32xf32>
    %97 = vector.extract_strided_slice %5 {offsets = [4, 0, 0], sizes = [1, 1, 32], strides = [1, 1, 1]} : vector<13x1x32xf32> to vector<1x1x32xf32>
    %98 = vector.shape_cast %97 : vector<1x1x32xf32> to vector<1x32xf32>
    %99 = vector.broadcast %98 : vector<1x32xf32> to vector<32x32xf32>
    %100 = arith.addf %96, %99 : vector<32x32xf32>
    %101 = vector.extract_strided_slice %4 {offsets = [5, 0, 0], sizes = [1, 32, 32], strides = [1, 1, 1]} : vector<6x32x32xf32> to vector<1x32x32xf32>
    %102 = vector.shape_cast %101 : vector<1x32x32xf32> to vector<32x32xf32>
    %103 = vector.extract_strided_slice %5 {offsets = [5, 0, 0], sizes = [1, 1, 32], strides = [1, 1, 1]} : vector<13x1x32xf32> to vector<1x1x32xf32>
    %104 = vector.shape_cast %103 : vector<1x1x32xf32> to vector<1x32xf32>
    %105 = vector.shape_cast %86 : vector<16x32xf32> to vector<2x8x4x8xf32>
    %106 = tpu.transpose %105, [0, 2, 1, 3] : vector<2x8x4x8xf32> -> vector<2x4x8x8xf32>
    %107 = vector.shape_cast %106 : vector<2x4x8x8xf32> to vector<8x8x8xf32>
    %108 = vector.shape_cast %93 : vector<32x32xf32> to vector<2x16x4x8xf32>
    %109 = tpu.transpose %108, [0, 2, 1, 3] : vector<2x16x4x8xf32> -> vector<2x4x16x8xf32>
    %110 = vector.shape_cast %109 : vector<2x4x16x8xf32> to vector<8x16x8xf32>
    %111 = vector.shape_cast %100 : vector<32x32xf32> to vector<2x16x4x8xf32>
    %112 = tpu.transpose %111, [0, 2, 1, 3] : vector<2x16x4x8xf32> -> vector<2x4x16x8xf32>
    %113 = vector.shape_cast %112 : vector<2x4x16x8xf32> to vector<8x16x8xf32>
    "tpu.trace_start"() <{level = 10 : i32, message = "bqd,bkd->bqk"}> : () -> ()
    %cst_31 = arith.constant dense<0.000000e+00> : vector<8x8x16xf32>
    %114 = tpu.matmul %107, %110, %cst_31 {dimension_numbers = #tpu.dot_dimension_numbers<[2], [2], [1], [1], [0, 0, 0, 1, 1, 1], [0], [0]>} : vector<8x8x8xf32>, vector<8x16x8xf32>, vector<8x8x16xf32> -> vector<8x8x16xf32>
    "tpu.trace_stop"() : () -> ()
    %cst_32 = arith.constant dense<0xFF800000> : vector<8x8xf32>
    %115 = vector.multi_reduction <maximumf>, %114, %cst_32 [2] : vector<8x8x16xf32> to vector<8x8xf32>
    %116 = vector.shape_cast %115 : vector<8x8xf32> to vector<8x8x1xf32>
    %117 = vector.broadcast %116 : vector<8x8x1xf32> to vector<8x8x16xf32>
    %118 = arith.subf %114, %117 : vector<8x8x16xf32>
    %119 = math.exp %118 : vector<8x8x16xf32>
    %cst_33 = arith.constant dense<0.000000e+00> : vector<8x8xf32>
    %120 = vector.multi_reduction <add>, %119, %cst_33 [2] : vector<8x8x16xf32> to vector<8x8xf32>
    %121 = vector.shape_cast %120 : vector<8x8xf32> to vector<8x8x1xf32>
    %122 = vector.broadcast %121 : vector<8x8x1xf32> to vector<8x8x16xf32>
    %123 = arith.divf %119, %122 : vector<8x8x16xf32>
    "tpu.trace_start"() <{level = 10 : i32, message = "bqk,bkd->bqd"}> : () -> ()
    %cst_34 = arith.constant dense<0.000000e+00> : vector<8x8x8xf32>
    %124 = tpu.matmul %123, %113, %cst_34 {dimension_numbers = #tpu.dot_dimension_numbers<[2], [1], [1], [2], [0, 0, 0, 1, 1, 2], [0], [0]>} : vector<8x8x16xf32>, vector<8x16x8xf32>, vector<8x8x8xf32> -> vector<8x8x8xf32>
    "tpu.trace_stop"() : () -> ()
    %125 = vector.shape_cast %124 : vector<8x8x8xf32> to vector<2x4x8x8xf32>
    %126 = tpu.transpose %125, [0, 2, 1, 3] : vector<2x4x8x8xf32> -> vector<2x8x4x8xf32>
    %127 = vector.shape_cast %126 : vector<2x8x4x8xf32> to vector<16x32xf32>
    %cst_35 = arith.constant dense<0.000000e+00> : vector<16x32xf32>
    %128 = tpu.matmul %127, %102, %cst_35 {dimension_numbers = #tpu.dot_dimension_numbers<[1], [0], [0], [1], [0, 0, 1, 1], [], []>} : vector<16x32xf32>, vector<32x32xf32>, vector<16x32xf32> -> vector<16x32xf32>
    %129 = vector.broadcast %104 : vector<1x32xf32> to vector<16x32xf32>
    %130 = arith.addf %128, %129 : vector<16x32xf32>
    %131 = arith.addf %0, %130 : vector<16x32xf32>
    %132 = vector.extract_strided_slice %5 {offsets = [8, 0, 0], sizes = [1, 1, 32], strides = [1, 1, 1]} : vector<13x1x32xf32> to vector<1x1x32xf32>
    %133 = vector.shape_cast %132 : vector<1x1x32xf32> to vector<1x32xf32>
    %134 = vector.extract_strided_slice %5 {offsets = [9, 0, 0], sizes = [1, 1, 32], strides = [1, 1, 1]} : vector<13x1x32xf32> to vector<1x1x32xf32>
    %135 = vector.shape_cast %134 : vector<1x1x32xf32> to vector<1x32xf32>
    %cst_36 = arith.constant dense<0.000000e+00> : vector<16xf32>
    %136 = vector.multi_reduction <add>, %131, %cst_36 [1] : vector<16x32xf32> to vector<16xf32>
    %137 = vector.shape_cast %136 : vector<16xf32> to vector<16x1xf32>
    %cst_37 = arith.constant 3.200000e+01 : f32
    %138 = vector.broadcast %cst_37 : f32 to vector<16x1xf32>
    %139 = arith.divf %137, %138 : vector<16x1xf32>
    %140 = vector.broadcast %139 : vector<16x1xf32> to vector<16x32xf32>
    %141 = arith.subf %131, %140 : vector<16x32xf32>
    %142 = arith.mulf %141, %141 : vector<16x32xf32>
    %cst_38 = arith.constant dense<0.000000e+00> : vector<16xf32>
    %143 = vector.multi_reduction <add>, %142, %cst_38 [1] : vector<16x32xf32> to vector<16xf32>
    %144 = vector.shape_cast %143 : vector<16xf32> to vector<16x1xf32>
    %cst_39 = arith.constant 3.200000e+01 : f32
    %145 = vector.broadcast %cst_39 : f32 to vector<16x1xf32>
    %146 = arith.divf %144, %145 : vector<16x1xf32>
    %147 = vector.broadcast %139 : vector<16x1xf32> to vector<16x32xf32>
    %148 = arith.subf %131, %147 : vector<16x32xf32>
    %cst_40 = arith.constant 9.99999974E-6 : f32
    %149 = vector.broadcast %cst_40 : f32 to vector<16x1xf32>
    %150 = arith.addf %146, %149 : vector<16x1xf32>
    %151 = math.rsqrt %150 : vector<16x1xf32>
    %152 = vector.broadcast %151 : vector<16x1xf32> to vector<16x32xf32>
    %153 = arith.mulf %148, %152 : vector<16x32xf32>
    %154 = vector.broadcast %133 : vector<1x32xf32> to vector<16x32xf32>
    %155 = arith.mulf %153, %154 : vector<16x32xf32>
    %156 = vector.broadcast %135 : vector<1x32xf32> to vector<16x32xf32>
    %157 = arith.addf %155, %156 : vector<16x32xf32>
    %c0_41 = arith.constant 0 : index
    %c0_42 = arith.constant 0 : index
    %158 = vector.load %arg8[%c0_41, %c0_42] : memref<32x128xf32, #tpu.memory_space<vmem>>, vector<32x128xf32>
    %cst_43 = arith.constant dense<0.000000e+00> : vector<16x128xf32>
    %159 = tpu.matmul %157, %158, %cst_43 {dimension_numbers = #tpu.dot_dimension_numbers<[1], [0], [0], [1], [0, 0, 1, 1], [], []>} : vector<16x32xf32>, vector<32x128xf32>, vector<16x128xf32> -> vector<16x128xf32>
    %c0_44 = arith.constant 0 : index
    %c0_45 = arith.constant 0 : index
    %160 = vector.load %arg9[%c0_44, %c0_45] : memref<1x128xf32, #tpu.memory_space<vmem>>, vector<1x128xf32>
    %161 = vector.broadcast %160 : vector<1x128xf32> to vector<16x128xf32>
    %162 = arith.addf %159, %161 : vector<16x128xf32>
    %cst_46 = arith.constant 0.000000e+00 : f32
    %163 = vector.broadcast %cst_46 : f32 to vector<16x128xf32>
    %164 = arith.maximumf %162, %163 : vector<16x128xf32>
    %c0_47 = arith.constant 0 : index
    %c0_48 = arith.constant 0 : index
    %165 = vector.load %arg10[%c0_47, %c0_48] : memref<128x32xf32, #tpu.memory_space<vmem>>, vector<128x32xf32>
    %cst_49 = arith.constant dense<0.000000e+00> : vector<16x32xf32>
    %166 = tpu.matmul %164, %165, %cst_49 {dimension_numbers = #tpu.dot_dimension_numbers<[1], [0], [0], [1], [0, 0, 1, 1], [], []>} : vector<16x128xf32>, vector<128x32xf32>, vector<16x32xf32> -> vector<16x32xf32>
    %167 = vector.extract_strided_slice %5 {offsets = [12, 0, 0], sizes = [1, 1, 32], strides = [1, 1, 1]} : vector<13x1x32xf32> to vector<1x1x32xf32>
    %168 = vector.shape_cast %167 : vector<1x1x32xf32> to vector<1x32xf32>
    %169 = vector.broadcast %168 : vector<1x32xf32> to vector<16x32xf32>
    %170 = arith.addf %166, %169 : vector<16x32xf32>
    %171 = arith.addf %170, %157 : vector<16x32xf32>
    %172 = vector.extract_strided_slice %5 {offsets = [10, 0, 0], sizes = [1, 1, 32], strides = [1, 1, 1]} : vector<13x1x32xf32> to vector<1x1x32xf32>
    %173 = vector.shape_cast %172 : vector<1x1x32xf32> to vector<1x32xf32>
    %174 = vector.extract_strided_slice %5 {offsets = [11, 0, 0], sizes = [1, 1, 32], strides = [1, 1, 1]} : vector<13x1x32xf32> to vector<1x1x32xf32>
    %175 = vector.shape_cast %174 : vector<1x1x32xf32> to vector<1x32xf32>
    %cst_50 = arith.constant dense<0.000000e+00> : vector<16xf32>
    %176 = vector.multi_reduction <add>, %171, %cst_50 [1] : vector<16x32xf32> to vector<16xf32>
    %177 = vector.shape_cast %176 : vector<16xf32> to vector<16x1xf32>
    %cst_51 = arith.constant 3.200000e+01 : f32
    %178 = vector.broadcast %cst_51 : f32 to vector<16x1xf32>
    %179 = arith.divf %177, %178 : vector<16x1xf32>
    %180 = vector.broadcast %179 : vector<16x1xf32> to vector<16x32xf32>
    %181 = arith.subf %171, %180 : vector<16x32xf32>
    %182 = arith.mulf %181, %181 : vector<16x32xf32>
    %cst_52 = arith.constant dense<0.000000e+00> : vector<16xf32>
    %183 = vector.multi_reduction <add>, %182, %cst_52 [1] : vector<16x32xf32> to vector<16xf32>
    %184 = vector.shape_cast %183 : vector<16xf32> to vector<16x1xf32>
    %cst_53 = arith.constant 3.200000e+01 : f32
    %185 = vector.broadcast %cst_53 : f32 to vector<16x1xf32>
    %186 = arith.divf %184, %185 : vector<16x1xf32>
    %187 = vector.broadcast %179 : vector<16x1xf32> to vector<16x32xf32>
    %188 = arith.subf %171, %187 : vector<16x32xf32>
    %cst_54 = arith.constant 9.99999974E-6 : f32
    %189 = vector.broadcast %cst_54 : f32 to vector<16x1xf32>
    %190 = arith.addf %186, %189 : vector<16x1xf32>
    %191 = math.rsqrt %190 : vector<16x1xf32>
    %192 = vector.broadcast %191 : vector<16x1xf32> to vector<16x32xf32>
    %193 = arith.mulf %188, %192 : vector<16x32xf32>
    %194 = vector.broadcast %173 : vector<1x32xf32> to vector<16x32xf32>
    %195 = arith.mulf %193, %194 : vector<16x32xf32>
    %196 = vector.broadcast %175 : vector<1x32xf32> to vector<16x32xf32>
    %197 = arith.addf %195, %196 : vector<16x32xf32>
    %c0_55 = arith.constant 0 : index
    %c0_56 = arith.constant 0 : index
    %198 = vector.load %arg11[%c0_55, %c0_56] : memref<16x32xf32, #tpu.memory_space<vmem>>, vector<16x32xf32>
    tpu.vector_store %arg11[%c0_55, %c0_56], %197 {strides = array<i32>} : memref<16x32xf32, #tpu.memory_space<vmem>>, vector<16x32xf32>,
    return
  }
}

</mosaic_0001>

<bundles_post_ra>
// kernel: tpu_custom_call.1
= control target key start
LH: loop header
LB: loop body
LE: loop exit
PB: predicated region body
PF: predicated region fallthrough
CT: control target
= control target key end

     0   :  { %16 = vsyncpa [#allocation3], 0  ;;  %s8726_s0 = inlined_call_operand.vmem [shape: f32[16,32], index: 0, kind: input, shape index: {}]   ;;  %s8727_s1 = inlined_call_operand.vmem [shape: f32[32,32], index: 1, kind: input, shape index: {}]   ;;  %s8728_s2 = inlined_call_operand.vmem [shape: f32[16,32], index: 2, kind: input, shape index: {}]   ;;  %s8729_s3 = inlined_call_operand.vmem [shape: f32[32,32], index: 3, kind: input, shape index: {}]   ;;  %s8730_s4 = inlined_call_operand.vmem [shape: f32[32,64], index: 4, kind: input, shape index: {}]   ;;  %s8731_s5 = inlined_call_operand.vmem [shape: f32[1,64], index: 5, kind: input, shape index: {}]   ;;  %s8732_s6 = inlined_call_operand.hbm [shape: f32[6,32,32], index: 6, kind: input, shape index: {}]   ;;  %s8733_s7 = inlined_call_operand.hbm [shape: f32[13,1,32], index: 7, kind: input, shape index: {}]   ;;  %s8734_s8 = inlined_call_operand.vmem [shape: f32[32,128], index: 8, kind: input, shape index: {}]   ;;  %s8735_s9 = inlined_call_operand.vmem [shape: f32[1,128], index: 9, kind: input, shape index: {}]   ;;  %s8736_s10 = inlined_call_operand.vmem [shape: f32[128,32], index: 10, kind: input, shape index: {}]   ;;  %s8737_s11 = inlined_call_operand.hbm [shape: f32[16,32], index: 11, kind: output, shape index: {}]  }
   0x1   :  { %17 = vsyncpa [#allocation6], 0 }
   0x2   :  { %18 = vsyncpa [#allocation4], 0  ;;  %s7571_s17 = smov [#allocation2]   ;;  %s7499_s21 = scalar_lea.hbm %s8732_s6, 3072 }
   0x3   :  { %s36_s18 = sshll.u32 %s7571_s17, 4  ;;  %p7500_p0 = scmp.ne.s32.totalorder %s8732_s6, %s7499_s21  ;;  %s37_s18 = int_to_ptr.vmem [resolvable:$true] %s36_s18 }
   0x4   :  { %p7503_p1 = scmp.lt.u32.totalorder %s7499_s21, %s8732_s6 }
   0x6   :  { %p7505_p2 = pnand %p7503_p1, %p7500_p0 }
   0x8   :  { %7508 = shalt.err (!%p7505_p2)
}
   0x9   :  { %s7509_s26 = scalar_lea.vmem %s37_s18, 3072  ;;  %p7514_p4 = scmp.lt.s32.totalorder %s37_s18, %s37_s18 }
   0xa   :  { %p7510_p3 = scmp.ne.s32.totalorder %s37_s18, %s7509_s26  ;;  %p7515_p5 = scmp.lt.s32.totalorder %s7509_s26, %s7509_s26 }
   0xc   :  { %p7516_p6 = por %p7515_p5, %p7514_p4 }
   0xe   :  { %p7517_p7 = pnand %p7516_p6, %p7510_p3 }
  0x10   :  { %7520 = shalt.err (!%p7517_p7)
}
  0x11   :  { %s7572_s27 = smov 128   ;;  %s7573_s28 = smov 8  }
  0x12   :  { %42 = dma.hbm_to_vmem [thread:$0]  %s8732_s6, 3072, %s37_s18, [#allocation3], %s7572_s27, %s7572_s27, %s7573_s28  }
  0x13   :  { %s7574_s12 = smov [#allocation5]   ;;  %s7521_s16 = scalar_lea.hbm %s8733_s7, 208 }
  0x14   :  { %s48_s13 = sshll.u32 %s7574_s12, 4  ;;  %p7522_p8 = scmp.ne.s32.totalorder %s8733_s7, %s7521_s16  ;;  %s49_s13 = int_to_ptr.vmem [resolvable:$true] %s48_s13 }
  0x15   :  { %p7525_p9 = scmp.lt.u32.totalorder %s7521_s16, %s8733_s7 }
  0x17   :  { %p7527_p10 = pnand %p7525_p9, %p7522_p8 }
  0x19   :  { %7530 = shalt.err (!%p7527_p10)
}
  0x1a   :  { %s7531_s22 = scalar_lea.vmem %s49_s13, 208  ;;  %s7535_s6 = scalar_lea.vmem %s49_s13, 224 }
  0x1b   :  { %p7532_p11 = scmp.ne.s32.totalorder %s49_s13, %s7531_s22  ;;  %p7536_p12 = scmp.lt.s32.totalorder %s49_s13, %s49_s13 }
  0x1c   :  { %p7537_p13 = scmp.lt.s32.totalorder %s7535_s6, %s7531_s22 }
  0x1e   :  { %p7538_p0 = por %p7537_p13, %p7536_p12 }
  0x20   :  { %p7539_p1 = pnand %p7538_p0, %p7532_p11 }
  0x22   :  { %7542 = shalt.err (!%p7539_p1)
}
  0x23   :  { %s7575_s18 = smov 16   ;;  %s7576_s23 = smov 1  }
  0x24   :  { %54 = dma.hbm_to_vmem [thread:$0]  %s8733_s7, 208, %s49_s13, [#allocation6], %s7575_s18, %s7575_s18, %s7576_s23  }
  0x25   :  { %7565 = dma.done.wait [#allocation3], 3072  }
  0x26   :  { %7566 = vsyncadd [#allocation3], 4294964224 }
  0x27   :  { %7567 = dma.done.wait [#allocation6], 208  }
  0x28   :  { %7568 = vsyncadd [#allocation6], 4294967088  ;;  %v118_v0 = vld [vmem:[%s8730_s4] sm:$0xff]  ;;  %v119_v1 = vld [vmem:[%s8730_s4 + $0x8] sm:$0xff]  ;;  %vm129_vm0 = vcmask 261120   ;;  %s7577_s25 = smov 104   ;;  %v323_v32 = vlaneseq }
  0x29   :  { %v120_v2 = vld [vmem:[%s8730_s4 + $0x10] sm:$0xff]  ;;  %v7248_v3 = vpack.c.bf16 %v119_v1, %v118_v0  ;;  %v121_v4 = vld [vmem:[%s8730_s4 + $0x18] sm:$0xff]  ;;  %v67_v5 = vld [vmem:[%s8726_s0] sm:$0xff]  ;;  %s7578_s26 = smov 120   ;;  %s7579_s29 = smov 112   ;;  %v7581_v29 = vmov 0.0  }
  0x2a   :  { %v73_v6 = vld [vmem:[%s8728_s2] sm:$0xff]  ;;  %v7252_v7 = vpack.c.bf16 %v121_v4, %v120_v2  ;;  %v68_v9 = vld [vmem:[%s8726_s0 + $0x8] sm:$0xff]  ;;  %v81_v19 = vld [vmem:[#allocation2 + $0x10] sm:$0xff]  ;;  %6949 = vmatprep.subr.mxu0 %v7581_v29  ;;  %vm7582_vm1 = vmmov 0   ;;  %v7583_v30 = vmov 1983009808  }
  0x2b   :  { %v116_v8 = vadd.f32 %v73_v6, %v67_v5  ;;  %7249 = vmatprep.subr.bf16.mxu1 %v7248_v3  ;;  %v74_v10 = vld [vmem:[%s8728_s2 + $0x8] sm:$0xff]  ;;  %v6646_v12 = vld [vmem:[%s8731_s5] ss:$0 sm:$0xff]  ;;  %v82_v21 = vld [vmem:[#allocation2 + $0x18] sm:$0xff]  ;;  %s7580_s5 = smov 96   ;;  %6951 = vmatprep.mubr.msk.f32.mxu0 %vm7582_vm1, %v7581_v29  ;;  %v321_v31 = vunpack.c.l.s4 %v7583_v30  ;;  %v324_v34 = vshrl.u32 %v323_v32, 7 }
  0x2c   :  { %7251 = vmatpush3.bf16.msra.mxu1 %v7248_v3  ;;  %v117_v11 = vadd.f32 %v74_v10, %v68_v9  ;;  %v79_v17 = vld [vmem:[#allocation2] sm:$0xff]  ;;  %v80_v18 = vld [vmem:[#allocation2 + $0x8] sm:$0xff]  ;;  %v7260_v22 = vpack.c.bf16 %v82_v21, %v81_v19  ;;  %v7584_v35 = vmov 1934713408   ;;  %vm1178_vm2 = vcmask 64512   ;;  %s7585_s30 = smov 24  }
  0x2d   :  { %6935 = vmatprep.mubr.msk.f32.mxu1 %vm129_vm0, %v116_v8  ;;  %7253 = vmatprep.subr.bf16.mxu1 %v7252_v7  ;;  %v7256_v20 = vpack.c.bf16 %v80_v18, %v79_v17  ;;  %v322_v33 = vunpack.c.0.s8 %v321_v31  ;;  %v353_v36 = vunpack.c.l.s4 %v7584_v35  ;;  %v6649_v2 = vld [vmem:[#allocation5] ss:$0 sm:$0xff]  ;;  %vm2757_vm3 = vcmask 130048   ;;  %vm8188_vm5 = vmpackc.low %vm1178_vm2, %vm1178_vm2 }
  0x2e   :  { %vm2760_vm4 = vcmask 195584  }
  0x2f   :  { %v7726_v38 = vsub.s32 %v322_v33, %v324_v34  ;;  %v354_v41 = vunpack.c.0.s8 %v353_v36 }
  0x30   :  { %7255 = vmatpush3.bf16.msra.mxu1 %v7252_v7 }
  0x31   :  { %7257 = vmatprep.subr.bf16.mxu1 %v7256_v20  ;;  %v7732_v48 = vsub.s32 %v354_v41, %v324_v34 }
  0x33   :  { %6936 = vmatmul.mubr.msk.f32.vlgmr.msra.gmra.mrb[0].mxu1 %vm129_vm0, %v117_v11 }
  0x34   :  { %6946 = vmatprep.mubr.msk.f32.mxu1 %vm129_vm0, %v67_v5  ;;  %7259 = vmatpush3.bf16.msra.mxu1 %v7256_v20 }
  0x35   :  { %7261 = vmatprep.subr.bf16.mxu1 %v7260_v22 }
  0x38   :  { %7263 = vmatpush3.bf16.msra.mxu1 %v7260_v22 }
  0x39   :  { %6954 = vmatprep.subr.mxu1 %v7581_v29 }
  0x3b   :  { %6947 = vmatmul.mubr.msk.f32.vlgmr.msra.gmra.mrb[2].mxu1 %vm129_vm0, %v68_v9 }
  0x3c   :  { %6956 = vmatprep.mubr.msk.f32.mxu1 %vm7582_vm1, %v7581_v29 }
 0x106   :  { %v6937_v13 = vpop.f32.mrb[0].mxu1 }
 0x107   :  { %v202_v14 = vpop.f32.mrb[1].mxu1  ;;  %v7709_v16 = vadd.f32 %v6937_v13, %v6646_v12 }
 0x108   :  { %v203_v15 = vadd.f32 %v6646_v12, %v202_v14 }
 0x10a   :  { %312 = vrot.lane.b32.xlu1 %v203_v15, %s7577_s25  ;;  %300 = vrot.lane.b32.xlu0 %v203_v15, %s7578_s26 }
 0x10e   :  { %302 = vrot.lane.b32.xlu1 %v7709_v16, %s7578_s26  ;;  %306 = vrot.lane.b32.xlu0 %v203_v15, %s7579_s29  ;;  %v6948_v5 = vpop.f32.mrb[2].mxu1 }
 0x10f   :  { %v7744_v10 = vadd.f32 %v6948_v5, %v6649_v2  ;;  %v289_v11 = vpop.f32.mrb[3].mxu1 }
 0x110   :  { %v7746_v12 = vadd.f32 %v6649_v2, %v289_v11 }
 0x112   :  { %314 = vrot.lane.b32.xlu1 %v7709_v16, %s7577_s25  ;;  %308 = vrot.lane.b32.xlu0 %v7709_v16, %s7579_s29 }
 0x116   :  { %590 = vrot.lane.b32.xlu0 %v203_v15, %s7580_s5 }
 0x17c   :  { %v313_v23 = vpop.permute.xlu1 %312  ;;  %v301_v24 = vpop.permute.xlu0 %300 }
 0x17d   :  { %594 = vrot.lane.b32.xlu1 %v301_v24, %s7580_s5  ;;  %v334_v39 = vcombine.low %v301_v24, %v313_v23  ;;  %v335_v43 = vcombine.high %v301_v24, %v313_v23 }
 0x17f   :  { %v342_v44 = vrot.slane %v334_v39, %v7726_v38  ;;  %v349_v51 = vrot.slane %v335_v43, %v7726_v38 }
 0x180   :  { %v307_v25 = vpop.permute.xlu0 %306  ;;  %v303_v26 = vpop.permute.xlu1 %302 }
 0x181   :  { %602 = vrot.lane.b32.xlu1 %v313_v23, %s7580_s5  ;;  %598 = vrot.lane.b32.xlu0 %v307_v25, %s7580_s5  ;;  %v318_v37 = vcombine.low %v203_v15, %v307_v25  ;;  %v319_v40 = vcombine.high %v203_v15, %v307_v25 }
 0x183   :  { %v326_v42 = vrot.slane %v318_v37, %v7726_v38  ;;  %v333_v45 = vrot.slane %v319_v40, %v7726_v38 }
 0x184   :  { %v315_v27 = vpop.permute.xlu1 %314  ;;  %v309_v28 = vpop.permute.xlu0 %308 }
 0x185   :  { %596 = vrot.lane.b32.xlu1 %v303_v26, %s7580_s5  ;;  %592 = vrot.lane.b32.xlu0 %v7709_v16, %s7580_s5  ;;  %v402_v46 = vcombine.low %v303_v26, %v315_v27  ;;  %v386_v47 = vcombine.low %v7709_v16, %v309_v28  ;;  %v350_v49 = vcombine.low %v326_v42, %v342_v44 }
 0x186   :  { %v351_v50 = vcombine.high %v326_v42, %v342_v44  ;;  %v403_v52 = vcombine.high %v303_v26, %v315_v27  ;;  %v387_v53 = vcombine.high %v7709_v16, %v309_v28  ;;  %v366_v54 = vcombine.low %v333_v45, %v349_v51 }
 0x187   :  { %v367_v55 = vcombine.high %v333_v45, %v349_v51  ;;  %v410_v56 = vrot.slane %v402_v46, %v7726_v38  ;;  %v394_v57 = vrot.slane %v386_v47, %v7726_v38  ;;  %v358_v58 = vrot.slane %v350_v49, %v7732_v48 }
 0x188   :  { %v365_v59 = vrot.slane %v351_v50, %v7732_v48  ;;  %v417_v60 = vrot.slane %v403_v52, %v7726_v38  ;;  %v401_v61 = vrot.slane %v387_v53, %v7726_v38  ;;  %v374_v62 = vrot.slane %v366_v54, %v7732_v48  ;;  %v591_v4 = vpop.permute.xlu0 %590 }
 0x189   :  { %604 = vrot.lane.b32.xlu1 %v315_v27, %s7580_s5  ;;  %600 = vrot.lane.b32.xlu0 %v309_v28, %s7580_s5  ;;  %v381_v63 = vrot.slane %v367_v55, %v7732_v48  ;;  %v418_v0 = vcombine.low %v394_v57, %v410_v56  ;;  %v419_v1 = vcombine.high %v394_v57, %v410_v56 }
 0x18a   :  { %v454_v3 = vcombine.low %v358_v58, %v365_v59  ;;  %v6652_v6 = vcombine.high %v358_v58, %v365_v59  ;;  %v434_v7 = vcombine.low %v401_v61, %v417_v60  ;;  %v435_v8 = vcombine.high %v401_v61, %v417_v60 }
 0x18b   :  { %v470_v13 = vcombine.low %v374_v62, %v381_v63  ;;  %v6653_v14 = vcombine.high %v374_v62, %v381_v63  ;;  %v426_v15 = vrot.slane %v418_v0, %v7732_v48  ;;  %v433_v16 = vrot.slane %v419_v1, %v7732_v48 }
 0x18c   :  { %v442_v17 = vrot.slane %v434_v7, %v7732_v48  ;;  %v449_v18 = vrot.slane %v435_v8, %v7732_v48  ;;  %v7755_v21 = vrot.slane %v454_v3, %v7726_v38  ;;  %v7758_v22 = vrot.slane %v6652_v6, %v7726_v38 }
 0x18d   :  { %888 = vrot.lane.b32.xlu1 %v7746_v12, %s7578_s26  ;;  %v522_v27 = vcombine.low %v426_v15, %v433_v16  ;;  %v7761_v28 = vrot.slane %v470_v13, %v7726_v38  ;;  %v7764_v30 = vrot.slane %v6653_v14, %v7726_v38  ;;  %v6654_v35 = vcombine.high %v426_v15, %v433_v16 }
 0x18e   :  { %v538_v36 = vcombine.low %v442_v17, %v449_v18  ;;  %v6655_v37 = vcombine.high %v442_v17, %v449_v18  ;;  %v486_v40 = vcombine.low %v7755_v21, %v7758_v22  ;;  %v487_v47 = vcombine.high %v7755_v21, %v7758_v22 }
 0x18f   :  { %v7773_v46 = vrot.slane %v522_v27, %v7726_v38  ;;  %v502_v49 = vcombine.low %v7761_v28, %v7764_v30  ;;  %v503_v50 = vcombine.high %v7761_v28, %v7764_v30  ;;  %v7786_v55 = vrot.slane %v6654_v35, %v7726_v38 }
 0x190   :  { %v7789_v56 = vrot.slane %v538_v36, %v7726_v38  ;;  %v7792_v57 = vrot.slane %v6655_v37, %v7726_v38  ;;  %v7795_v59 = vrot.slane %v486_v40, %v7732_v48 }
 0x1ef   :  { %v595_v9 = vpop.permute.xlu1 %594 }
 0x1f3   :  { %v603_v19 = vpop.permute.xlu1 %602  ;;  %v599_v20 = vpop.permute.xlu0 %598 }
 0x1f4   :  { %v630_v23 = vcombine.low %v595_v9, %v603_v19  ;;  %v631_v24 = vcombine.high %v595_v9, %v603_v19  ;;  %v614_v25 = vcombine.low %v591_v4, %v599_v20  ;;  %v615_v26 = vcombine.high %v591_v4, %v599_v20 }
 0x1f6   :  { %v638_v31 = vrot.slane %v630_v23, %v7726_v38  ;;  %v645_v32 = vrot.slane %v631_v24, %v7726_v38  ;;  %v622_v33 = vrot.slane %v614_v25, %v7726_v38  ;;  %v629_v34 = vrot.slane %v615_v26, %v7726_v38 }
 0x1f7   :  { %v597_v39 = vpop.permute.xlu1 %596  ;;  %v593_v45 = vpop.permute.xlu0 %592  ;;  %v510_v25 = vrot.slane %v502_v49, %v7732_v48  ;;  %v501_v26 = vrot.slane %v487_v47, %v7732_v48 }
 0x1f8   :  { %v646_v41 = vcombine.low %v622_v33, %v638_v31  ;;  %v647_v42 = vcombine.high %v622_v33, %v638_v31  ;;  %v662_v43 = vcombine.low %v629_v34, %v645_v32  ;;  %v663_v44 = vcombine.high %v629_v34, %v645_v32 }
 0x1fa   :  { %v654_v51 = vrot.slane %v646_v41, %v7732_v48  ;;  %v661_v52 = vrot.slane %v647_v42, %v7732_v48  ;;  %v670_v53 = vrot.slane %v662_v43, %v7732_v48  ;;  %v677_v54 = vrot.slane %v663_v44, %v7732_v48 }
 0x1fb   :  { %v605_v58 = vpop.permute.xlu1 %604  ;;  %v601_v0 = vpop.permute.xlu0 %600  ;;  %v518_v41 = vcombine.low %v7795_v59, %v510_v25  ;;  %v517_v42 = vrot.slane %v503_v50, %v7732_v48  ;;  %v554_v43 = vcombine.low %v7773_v46, %v7786_v55  ;;  %v570_v50 = vcombine.low %v7789_v56, %v7792_v57 }
 0x1fc   :  { %v750_v60 = vcombine.low %v654_v51, %v661_v52  ;;  %v6656_v61 = vcombine.high %v654_v51, %v661_v52  ;;  %v766_v62 = vcombine.low %v670_v53, %v677_v54  ;;  %v6657_v63 = vcombine.high %v670_v53, %v677_v54 }
 0x1fd   :  { %v698_v1 = vcombine.low %v597_v39, %v605_v58  ;;  %v699_v2 = vcombine.high %v597_v39, %v605_v58  ;;  %v682_v3 = vcombine.low %v593_v45, %v601_v0  ;;  %v683_v4 = vcombine.high %v593_v45, %v601_v0 }
 0x1fe   :  { %v757_v5 = vrot.slane %v750_v60, %v7726_v38  ;;  %v765_v6 = vrot.slane %v6656_v61, %v7726_v38  ;;  %v773_v7 = vrot.slane %v766_v62, %v7726_v38  ;;  %v781_v8 = vrot.slane %v6657_v63, %v7726_v38 }
 0x1ff   :  { %v706_v9 = vrot.slane %v698_v1, %v7726_v38  ;;  %v713_v11 = vrot.slane %v699_v2, %v7726_v38  ;;  %v690_v13 = vrot.slane %v682_v3, %v7726_v38  ;;  %v697_v14 = vrot.slane %v683_v4, %v7726_v38 }
 0x200   :  { %v782_v15 = vcombine.low %v757_v5, %v765_v6  ;;  %v783_v16 = vcombine.high %v757_v5, %v765_v6  ;;  %v798_v17 = vcombine.low %v773_v7, %v781_v8  ;;  %v799_v18 = vcombine.high %v773_v7, %v781_v8 }
 0x201   :  { %v714_v19 = vcombine.low %v690_v13, %v706_v9  ;;  %v715_v20 = vcombine.high %v690_v13, %v706_v9  ;;  %v730_v21 = vcombine.low %v697_v14, %v713_v11  ;;  %v731_v22 = vcombine.high %v697_v14, %v713_v11 }
 0x202   :  { %v790_v23 = vrot.slane %v782_v15, %v7732_v48  ;;  %v806_v24 = vrot.slane %v798_v17, %v7732_v48  ;;  %v797_v34 = vrot.slane %v783_v16, %v7732_v48  ;;  %v813_v35 = vrot.slane %v799_v18, %v7732_v48 }
 0x203   :  { %v722_v27 = vrot.slane %v714_v19, %v7732_v48  ;;  %v729_v28 = vrot.slane %v715_v20, %v7732_v48  ;;  %v738_v30 = vrot.slane %v730_v21, %v7732_v48  ;;  %v745_v31 = vrot.slane %v731_v22, %v7732_v48 }
 0x204   :  { %v814_v32 = vcombine.low %v790_v23, %v806_v24  ;;  %v815_v33 = vcombine.high %v790_v23, %v806_v24  ;;  %v519_v51 = vcombine.high %v7795_v59, %v510_v25  ;;  %v816_v52 = vcombine.low %v797_v34, %v813_v35 }
 0x205   :  { %v818_v36 = vcombine.low %v722_v27, %v729_v28  ;;  %v6658_v37 = vcombine.high %v722_v27, %v729_v28  ;;  %v834_v39 = vcombine.low %v738_v30, %v745_v31  ;;  %v6659_v40 = vcombine.high %v738_v30, %v745_v31 }
 0x206   :  { %6950 = vmatpush3.xpose.msk.msra.mxu0 %vm1178_vm2, %v814_v32  ;;  %6955 = vmatpush3.xpose.msk.msra.mxu1 %vm1178_vm2, %v815_v33  ;;  %v817_v53 = vcombine.high %v797_v34, %v813_v35  ;;  %v520_v62 = vcombine.low %v501_v26, %v517_v42  ;;  %v555_v59 = vcombine.high %v7773_v46, %v7786_v55 }
 0x207   :  { %v825_v44 = vrot.slane %v818_v36, %v7726_v38  ;;  %v833_v45 = vrot.slane %v6658_v37, %v7726_v38  ;;  %v841_v47 = vrot.slane %v834_v39, %v7726_v38  ;;  %v849_v49 = vrot.slane %v6659_v40, %v7726_v38  ;;  %6959 = vmatprep.subr.mxu0 %v7581_v29 }
 0x208   :  { %6964 = vmatprep.subr.mxu1 %v7581_v29  ;;  %v571_v63 = vcombine.high %v7789_v56, %v7792_v57  ;;  %v521_v0 = vcombine.high %v501_v26, %v517_v42  ;;  %v562_v46 = vrot.slane %v554_v43, %v7732_v48  ;;  %v578_v55 = vrot.slane %v570_v50, %v7732_v48 }
 0x209   :  { %v850_v54 = vcombine.low %v825_v44, %v833_v45  ;;  %v851_v58 = vcombine.high %v825_v44, %v833_v45  ;;  %v866_v60 = vcombine.low %v841_v47, %v849_v49  ;;  %v867_v61 = vcombine.high %v841_v47, %v849_v49  ;;  %6952 = vmatmul.mubr.msk.f32.vlgmr.msra.gmra.mrb[0].mxu0 %vm1178_vm2, %v518_v41  ;;  %v889_v41 = vpop.permute.xlu1 %888 }
 0x20a   :  { %6957 = vmatmul.mubr.msk.f32.vlgmr.msra.gmra.mrb[4].mxu1 %vm1178_vm2, %v519_v51  ;;  %6960 = vmatpush3.xpose.msk.msra.mxu0 %vm1178_vm2, %v816_v52  ;;  %v569_v5 = vrot.slane %v555_v59, %v7732_v48  ;;  %v586_v6 = vcombine.low %v562_v46, %v578_v55  ;;  %v587_v7 = vcombine.high %v562_v46, %v578_v55 }
 0x20b   :  { %6965 = vmatpush3.xpose.msk.msra.mxu1 %vm1178_vm2, %v817_v53  ;;  %6961 = vmatprep.mubr.msk.f32.mxu0 %vm7582_vm1, %v7581_v29  ;;  %v858_v1 = vrot.slane %v850_v54, %v7732_v48  ;;  %v874_v2 = vrot.slane %v866_v60, %v7732_v48  ;;  %v865_v56 = vrot.slane %v851_v58, %v7732_v48 }
 0x20c   :  { %6966 = vmatprep.mubr.msk.f32.mxu1 %vm7582_vm1, %v7581_v29  ;;  %6969 = vmatprep.subr.mxu0 %v7581_v29  ;;  %v881_v4 = vrot.slane %v867_v61, %v7732_v48  ;;  %v585_v8 = vrot.slane %v571_v63, %v7732_v48 }
 0x20d   :  { %6962 = vmatmul.mubr.msk.f32.vlgmr.msra.gmra.mrb[2].mxu0 %vm1178_vm2, %v520_v62  ;;  %6974 = vmatprep.subr.mxu1 %v7581_v29  ;;  %v882_v57 = vcombine.low %v858_v1, %v874_v2  ;;  %v883_v3 = vcombine.high %v858_v1, %v874_v2 }
 0x20e   :  { %6967 = vmatmul.mubr.msk.f32.vlgmr.msra.gmra.mrb[6].mxu1 %vm1178_vm2, %v521_v0  ;;  %6971 = vmatprep.mubr.msk.f32.mxu0 %vm7582_vm1, %v7581_v29  ;;  %v884_v9 = vcombine.low %v865_v56, %v881_v4  ;;  %v885_v11 = vcombine.high %v865_v56, %v881_v4  ;;  %v588_v13 = vcombine.low %v569_v5, %v585_v8 }
 0x20f   :  { %6970 = vmatpush3.xpose.msk.msra.mxu0 %vm1178_vm2, %v882_v57  ;;  %6975 = vmatpush3.xpose.msk.msra.mxu1 %vm1178_vm2, %v883_v3  ;;  %v589_v14 = vcombine.high %v569_v5, %v585_v8 }
 0x210   :  { %6976 = vmatprep.mubr.msk.f32.mxu1 %vm7582_vm1, %v7581_v29  ;;  %6979 = vmatprep.subr.mxu0 %v7581_v29 }
 0x211   :  { %6984 = vmatprep.subr.mxu1 %v7581_v29 }
 0x212   :  { %6972 = vmatmul.mubr.msk.f32.vlgmr.msra.gmra.mrb[4].mxu0 %vm1178_vm2, %v586_v6  ;;  %6977 = vmatmul.mubr.msk.f32.vlgmr.msra.gmra.mrb[8].mxu1 %vm1178_vm2, %v587_v7 }
 0x213   :  { %6980 = vmatpush3.xpose.msk.msra.mxu0 %vm1178_vm2, %v884_v9  ;;  %6985 = vmatpush3.xpose.msk.msra.mxu1 %vm1178_vm2, %v885_v11 }
 0x214   :  { %6981 = vmatprep.mubr.msk.f32.mxu0 %vm7582_vm1, %v7581_v29  ;;  %6986 = vmatprep.mubr.msk.f32.mxu1 %vm7582_vm1, %v7581_v29 }
 0x215   :  { %6989 = vmatprep.subr.mxu0 %v7581_v29  ;;  %6994 = vmatprep.subr.mxu1 %v7581_v29 }
 0x216   :  { %6982 = vmatmul.mubr.msk.f32.vlgmr.msra.gmra.mrb[6].mxu0 %vm1178_vm2, %v588_v13  ;;  %6987 = vmatmul.mubr.msk.f32.vlgmr.msra.gmra.mrb[10].mxu1 %vm1178_vm2, %v589_v14 }
 0x217   :  { %6991 = vmatprep.mubr.msk.f32.mxu0 %vm7582_vm1, %v7581_v29  ;;  %6996 = vmatprep.mubr.msk.f32.mxu1 %vm7582_vm1, %v7581_v29 }
 0x2dc   :  { %v1251_v15 = vpop.f32.mrb[0].mxu0 }
 0x2dd   :  { %v1327_v16 = vpop.f32.mrb[4].mxu1  ;;  %v6953_v17 = vpop.f32.mrb[1].mxu0  ;;  %v1787_v18 = vsel %vm1178_vm2, %v1251_v15, -inf }
 0x2de   :  { %v6958_v19 = vpop.f32.mrb[5].mxu1  ;;  %v1790_v20 = vsel %vm1178_vm2, %v1327_v16, -inf  ;;  %1788 = vmax.xlane.f32.xlu0 %v1787_v18 }
 0x2df   :  { %1791 = vmax.xlane.f32.xlu1 %v1790_v20 }
 0x2e0   :  { %v1403_v21 = vpop.f32.mrb[2].mxu0 }
 0x2e1   :  { %v1479_v22 = vpop.f32.mrb[6].mxu1  ;;  %v6963_v23 = vpop.f32.mrb[3].mxu0  ;;  %v1793_v24 = vsel %vm1178_vm2, %v1403_v21, -inf }
 0x2e2   :  { %v6968_v25 = vpop.f32.mrb[7].mxu1  ;;  %1794 = vmax.xlane.f32.xlu0 %v1793_v24  ;;  %v1796_v28 = vsel %vm1178_vm2, %v1479_v22, -inf }
 0x2e5   :  { %v1555_v26 = vpop.f32.mrb[4].mxu0  ;;  %v1631_v27 = vpop.f32.mrb[8].mxu1 }
 0x2e6   :  { %v6973_v30 = vpop.f32.mrb[5].mxu0  ;;  %v6978_v31 = vpop.f32.mrb[9].mxu1  ;;  %1797 = vmax.xlane.f32.xlu0 %v1796_v28  ;;  %v1799_v32 = vsel %vm1178_vm2, %v1555_v26, -inf  ;;  %v1802_v35 = vsel %vm1178_vm2, %v1631_v27, -inf }
 0x2e7   :  { %1800 = vmax.xlane.f32.xlu1 %v1799_v32 }
 0x2e9   :  { %v1707_v33 = vpop.f32.mrb[6].mxu0  ;;  %v7883_v34 = vpop.f32.mrb[10].mxu1 }
 0x2ea   :  { %v6983_v36 = vpop.f32.mrb[7].mxu0  ;;  %v6988_v37 = vpop.f32.mrb[11].mxu1  ;;  %1803 = vmax.xlane.f32.xlu0 %v1802_v35  ;;  %v1805_v39 = vsel %vm1178_vm2, %v1707_v33, -inf  ;;  %v1808_v40 = vsel %vm1178_vm2, %v7883_v34, -inf }
 0x2eb   :  { %1806 = vmax.xlane.f32.xlu1 %v1805_v39 }
 0x2ee   :  { %1809 = vmax.xlane.f32.xlu0 %v1808_v40 }
 0x2fc   :  { %900 = vrot.lane.b32.xlu1 %v7746_v12, %s7577_s25 }
 0x304   :  { %894 = vrot.lane.b32.xlu0 %v7746_v12, %s7579_s29 }
 0x36b   :  { %v1789_v42 = vpop.xlane.xlu0 %1788 }
 0x36c   :  { %v1792_v43 = vpop.xlane.xlu1 %1791  ;;  %v1811_v44 = vsub.f32 %v1251_v15, %v1789_v42 }
 0x36d   :  { %v1812_v45 = vsub.f32 %v1327_v16, %v1792_v43 }
 0x36e   :  { %v1819_v47 = vmul.f32 1.442695, %v1811_v44 }
 0x36f   :  { %v1821_v49 = vmul.f32 1.442695, %v1812_v45  ;;  %v1795_v51 = vpop.xlane.xlu0 %1794 }
 0x370   :  { %7417 = vpow2.f32 %v1819_v47  ;;  %v1813_v52 = vsub.f32 %v1403_v21, %v1795_v51 }
 0x371   :  { %7419 = vpow2.f32 %v1821_v49 }
 0x372   :  { %v1823_v53 = vmul.f32 1.442695, %v1813_v52 }
 0x373   :  { %v1798_v50 = vpop.xlane.xlu0 %1797 }
 0x374   :  { %7421 = vpow2.f32 %v1823_v53  ;;  %v1801_v54 = vpop.xlane.xlu1 %1800  ;;  %v1814_v58 = vsub.f32 %v1479_v22, %v1798_v50 }
 0x375   :  { %v1815_v60 = vsub.f32 %v1555_v26, %v1801_v54 }
 0x376   :  { %v1825_v61 = vmul.f32 1.442695, %v1814_v58 }
 0x377   :  { %v1827_v62 = vmul.f32 1.442695, %v1815_v60  ;;  %v1804_v59 = vpop.xlane.xlu0 %1803 }
 0x378   :  { %7423 = vpow2.f32 %v1825_v61  ;;  %v1807_v63 = vpop.xlane.xlu1 %1806  ;;  %v1816_v0 = vsub.f32 %v1631_v27, %v1804_v59 }
 0x379   :  { %7425 = vpow2.f32 %v1827_v62  ;;  %v1817_v1 = vsub.f32 %v1707_v33, %v1807_v63 }
 0x37a   :  { %v7893_v2 = vpop.eup %7417  ;;  %v1829_v46 = vmul.f32 1.442695, %v1816_v0 }
 0x37b   :  { %v7895_v55 = vpop.eup %7419  ;;  %v1831_v56 = vmul.f32 1.442695, %v1817_v1  ;;  %v7897_v57 = vpop.xlane.xlu0 %1809  ;;  %v1835_v3 = vsel %vm1178_vm2, %v7893_v2, 0.0 }
 0x37c   :  { %7427 = vpow2.f32 %v1829_v46  ;;  %v901_v4 = vpop.permute.xlu1 %900  ;;  %v1838_v5 = vsel %vm1178_vm2, %v7895_v55, 0.0  ;;  %1836 = vadd.xlane.f32.xlu1 %v1835_v3  ;;  %v1818_v59 = vsub.f32 %v7883_v34, %v7897_v57 }
 0x37d   :  { %1839 = vadd.xlane.f32.xlu0 %v1838_v5  ;;  %7429 = vpow2.f32 %v1831_v56  ;;  %v922_v7 = vcombine.low %v889_v41, %v901_v4  ;;  %v923_v8 = vcombine.high %v889_v41, %v901_v4 }
 0x37e   :  { %v7903_v6 = vpop.eup %7421  ;;  %v1833_v63 = vmul.f32 1.442695, %v1818_v59 }
 0x37f   :  { %v895_v9 = vpop.permute.xlu0 %894  ;;  %v1841_v11 = vsel %vm1178_vm2, %v7903_v6, 0.0  ;;  %v930_v16 = vrot.slane %v922_v7, %v7726_v38  ;;  %v937_v17 = vrot.slane %v923_v8, %v7726_v38 }
 0x380   :  { %v906_v13 = vcombine.low %v7746_v12, %v895_v9  ;;  %v907_v14 = vcombine.high %v7746_v12, %v895_v9  ;;  %1842 = vadd.xlane.f32.xlu1 %v1841_v11  ;;  %7431 = vpow2.f32 %v1833_v63 }
 0x382   :  { %v7909_v15 = vpop.eup %7423  ;;  %v914_v18 = vrot.slane %v906_v13, %v7726_v38  ;;  %v921_v19 = vrot.slane %v907_v14, %v7726_v38 }
 0x383   :  { %v7915_v20 = vpop.eup %7425  ;;  %v1844_v21 = vsel %vm1178_vm2, %v7909_v15, 0.0 }
 0x384   :  { %v938_v22 = vcombine.low %v914_v18, %v930_v16  ;;  %v939_v23 = vcombine.high %v914_v18, %v930_v16  ;;  %v954_v24 = vcombine.low %v921_v19, %v937_v17  ;;  %v955_v12 = vcombine.high %v921_v19, %v937_v17  ;;  %1845 = vadd.xlane.f32.xlu0 %v1844_v21 }
 0x385   :  { %v1847_v25 = vsel %vm1178_vm2, %v7915_v20, 0.0 }
 0x386   :  { %v7921_v26 = vpop.eup %7427  ;;  %v946_v27 = vrot.slane %v938_v22, %v7732_v48  ;;  %v953_v28 = vrot.slane %v939_v23, %v7732_v48  ;;  %v962_v30 = vrot.slane %v954_v24, %v7732_v48  ;;  %v969_v31 = vrot.slane %v955_v12, %v7732_v48  ;;  %1848 = vadd.xlane.f32.xlu1 %v1847_v25 }
 0x387   :  { %v1850_v32 = vsel %vm1178_vm2, %v7921_v26, 0.0  ;;  %v7929_v33 = vpop.eup %7429 }
 0x388   :  { %v1042_v35 = vcombine.low %v946_v27, %v953_v28  ;;  %v6660_v36 = vcombine.high %v946_v27, %v953_v28  ;;  %v1058_v37 = vcombine.low %v962_v30, %v969_v31  ;;  %v6661_v39 = vcombine.high %v962_v30, %v969_v31  ;;  %1851 = vadd.xlane.f32.xlu0 %v1850_v32 }
 0x389   :  { %v1853_v44 = vsel %vm1178_vm2, %v7929_v33, 0.0 }
 0x38a   :  { %v1049_v40 = vrot.slane %v1042_v35, %v7726_v38  ;;  %v1057_v41 = vrot.slane %v6660_v36, %v7726_v38  ;;  %v1065_v42 = vrot.slane %v1058_v37, %v7726_v38  ;;  %v1073_v43 = vrot.slane %v6661_v39, %v7726_v38  ;;  %v7949_v0 = vpop.eup %7431 }
 0x38b   :  { %v1856_v1 = vsel %vm1178_vm2, %v7949_v0, 0.0 }
 0x38c   :  { %1854 = vadd.xlane.f32.xlu0 %v1853_v44  ;;  %v1074_v45 = vcombine.low %v1049_v40, %v1057_v41  ;;  %v1090_v47 = vcombine.low %v1065_v42, %v1073_v43  ;;  %v1075_v49 = vcombine.high %v1049_v40, %v1057_v41  ;;  %v1091_v51 = vcombine.high %v1065_v42, %v1073_v43 }
 0x38e   :  { %v1082_v52 = vrot.slane %v1074_v45, %v7732_v48  ;;  %v1098_v53 = vrot.slane %v1090_v47, %v7732_v48  ;;  %v1089_v50 = vrot.slane %v1075_v49, %v7732_v48  ;;  %v1105_v54 = vrot.slane %v1091_v51, %v7732_v48 }
 0x390   :  { %v1106_v58 = vcombine.low %v1082_v52, %v1098_v53  ;;  %v1107_v60 = vcombine.high %v1082_v52, %v1098_v53  ;;  %v1108_v61 = vcombine.low %v1089_v50, %v1105_v54  ;;  %v1109_v62 = vcombine.high %v1089_v50, %v1105_v54 }
 0x392   :  { %6990 = vmatpush3.msra.mxu0 %v1106_v58  ;;  %6995 = vmatpush3.msra.mxu1 %v1107_v60 }
 0x393   :  { %6999 = vmatprep.subr.mxu0 %v7581_v29  ;;  %7004 = vmatprep.subr.mxu1 %v7581_v29 }
 0x397   :  { %896 = vrot.lane.b32.xlu1 %v7744_v10, %s7579_s29 }
 0x3a2   :  { %890 = vrot.lane.b32.xlu0 %v7744_v10, %s7578_s26 }
 0x3bb   :  { %1857 = vadd.xlane.f32.xlu1 %v1856_v1 }
 0x3cc   :  { %902 = vrot.lane.b32.xlu1 %v7744_v10, %s7577_s25 }
 0x409   :  { %v1837_v46 = vpop.xlane.xlu1 %1836 }
 0x40a   :  { %7433 = vrcp.f32 %v1837_v46  ;;  %v1840_v56 = vpop.xlane.xlu0 %1839 }
 0x40b   :  { %7435 = vrcp.f32 %v1840_v56 }
 0x40d   :  { %v1843_v3 = vpop.xlane.xlu1 %1842 }
 0x40e   :  { %7437 = vrcp.f32 %v1843_v3 }
 0x411   :  { %v1846_v4 = vpop.xlane.xlu0 %1845 }
 0x412   :  { %7439 = vrcp.f32 %v1846_v4 }
 0x414   :  { %v7434_v34 = vpop.eup %7433 }
 0x415   :  { %v7436_v57 = vpop.eup %7435  ;;  %v1860_v5 = vmul.f32 %v7434_v34, %v7893_v2  ;;  %v1852_v11 = vpop.xlane.xlu0 %1851 }
 0x416   :  { %v1862_v7 = vmul.f32 %v7436_v57, %v7895_v55 }
 0x417   :  { %6992 = vmatmul.mubr.msk.f32.vlgmr.msra.gmra.mrb[8].mxu0 %vm1178_vm2, %v1860_v5 }
 0x418   :  { %v7438_v8 = vpop.eup %7437  ;;  %6997 = vmatmul.mubr.msk.f32.vlgmr.msra.gmra.mrb[12].mxu1 %vm1178_vm2, %v1862_v7  ;;  %7000 = vmatpush3.msra.mxu0 %v1108_v61 }
 0x419   :  { %v1864_v9 = vmul.f32 %v7438_v8, %v7903_v6  ;;  %7005 = vmatpush3.msra.mxu1 %v1109_v62  ;;  %7001 = vmatprep.mubr.msk.f32.mxu0 %vm7582_vm1, %v7581_v29  ;;  %v1849_v6 = vpop.xlane.xlu1 %1848  ;;  %v1855_v14 = vpop.xlane.xlu0 %1854 }
 0x41a   :  { %7006 = vmatprep.mubr.msk.f32.mxu1 %vm7582_vm1, %v7581_v29  ;;  %7009 = vmatprep.subr.mxu0 %v7581_v29  ;;  %7441 = vrcp.f32 %v1849_v6 }
 0x41b   :  { %7002 = vmatmul.mubr.msk.f32.vlgmr.msra.gmra.mrb[10].mxu0 %vm1178_vm2, %v1864_v9  ;;  %7014 = vmatprep.subr.mxu1 %v7581_v29  ;;  %7443 = vrcp.f32 %v1852_v11 }
 0x41c   :  { %v7440_v2 = vpop.eup %7439  ;;  %7011 = vmatprep.mubr.msk.f32.mxu0 %vm7582_vm1, %v7581_v29  ;;  %7445 = vrcp.f32 %v1855_v14 }
 0x41d   :  { %v1866_v55 = vmul.f32 %v7440_v2, %v7909_v15  ;;  %v897_v13 = vpop.permute.xlu1 %896  ;;  %v891_v19 = vpop.permute.xlu0 %890 }
 0x41e   :  { %v974_v17 = vcombine.low %v7744_v10, %v897_v13  ;;  %v975_v18 = vcombine.high %v7744_v10, %v897_v13 }
 0x41f   :  { %7007 = vmatmul.mubr.msk.f32.vlgmr.msra.gmra.mrb[14].mxu1 %vm1178_vm2, %v1866_v55 }
 0x420   :  { %7016 = vmatprep.mubr.msk.f32.mxu1 %vm7582_vm1, %v7581_v29  ;;  %v982_v15 = vrot.slane %v974_v17, %v7726_v38  ;;  %v989_v24 = vrot.slane %v975_v18, %v7726_v38 }
 0x424   :  { %v7442_v47 = vpop.eup %7441 }
 0x425   :  { %v7444_v50 = vpop.eup %7443  ;;  %v1868_v46 = vmul.f32 %v7442_v47, %v7915_v20 }
 0x426   :  { %v7446_v60 = vpop.eup %7445  ;;  %v1870_v56 = vmul.f32 %v7444_v50, %v7921_v26 }
 0x427   :  { %v1872_v34 = vmul.f32 %v7446_v60, %v7929_v33 }
 0x448   :  { %v1858_v16 = vpop.xlane.xlu1 %1857 }
 0x449   :  { %7447 = vrcp.f32 %v1858_v16 }
 0x44c   :  { %v903_v21 = vpop.permute.xlu1 %902 }
 0x44d   :  { %v990_v22 = vcombine.low %v891_v19, %v903_v21  ;;  %v991_v23 = vcombine.high %v891_v19, %v903_v21 }
 0x44f   :  { %v998_v12 = vrot.slane %v990_v22, %v7726_v38  ;;  %v1005_v25 = vrot.slane %v991_v23, %v7726_v38 }
 0x451   :  { %v1006_v27 = vcombine.low %v982_v15, %v998_v12  ;;  %v1007_v28 = vcombine.high %v982_v15, %v998_v12  ;;  %v1022_v30 = vcombine.low %v989_v24, %v1005_v25  ;;  %v1023_v31 = vcombine.high %v989_v24, %v1005_v25 }
 0x453   :  { %v1014_v10 = vrot.slane %v1006_v27, %v7732_v48  ;;  %v1021_v32 = vrot.slane %v1007_v28, %v7732_v48  ;;  %v1030_v35 = vrot.slane %v1022_v30, %v7732_v48  ;;  %v1037_v36 = vrot.slane %v1023_v31, %v7732_v48  ;;  %v7448_v1 = vpop.eup %7447 }
 0x454   :  { %v1874_v57 = vmul.f32 %v7448_v1, %v7949_v0 }
 0x455   :  { %v1110_v37 = vcombine.low %v1014_v10, %v1021_v32  ;;  %v6662_v39 = vcombine.high %v1014_v10, %v1021_v32  ;;  %v1126_v40 = vcombine.low %v1030_v35, %v1037_v36  ;;  %v6663_v41 = vcombine.high %v1030_v35, %v1037_v36 }
 0x457   :  { %v1117_v42 = vrot.slane %v1110_v37, %v7726_v38  ;;  %v1125_v43 = vrot.slane %v6662_v39, %v7726_v38  ;;  %v1133_v44 = vrot.slane %v1126_v40, %v7726_v38  ;;  %v1141_v45 = vrot.slane %v6663_v41, %v7726_v38 }
 0x459   :  { %v1142_v49 = vcombine.low %v1117_v42, %v1125_v43  ;;  %v1158_v51 = vcombine.low %v1133_v44, %v1141_v45  ;;  %v1143_v52 = vcombine.high %v1117_v42, %v1125_v43  ;;  %v1159_v53 = vcombine.high %v1133_v44, %v1141_v45 }
 0x45b   :  { %v1150_v54 = vrot.slane %v1142_v49, %v7732_v48  ;;  %v1166_v58 = vrot.slane %v1158_v51, %v7732_v48  ;;  %v1157_v61 = vrot.slane %v1143_v52, %v7732_v48  ;;  %v1173_v62 = vrot.slane %v1159_v53, %v7732_v48 }
 0x45d   :  { %v1174_v59 = vcombine.low %v1150_v54, %v1166_v58  ;;  %v1175_v63 = vcombine.high %v1150_v54, %v1166_v58  ;;  %v1176_v3 = vcombine.low %v1157_v61, %v1173_v62  ;;  %v1177_v4 = vcombine.high %v1157_v61, %v1173_v62 }
 0x45f   :  { %7010 = vmatpush3.msra.mxu0 %v1174_v59  ;;  %7015 = vmatpush3.msra.mxu1 %v1175_v63 }
 0x460   :  { %7012 = vmatmul.mubr.msk.f32.vlgmr.msra.gmra.mrb[12].mxu0 %vm1178_vm2, %v1868_v46  ;;  %7017 = vmatmul.mubr.msk.f32.vlgmr.msra.gmra.mrb[16].mxu1 %vm1178_vm2, %v1870_v56 }
 0x461   :  { %7019 = vmatprep.subr.mxu0 %v7581_v29  ;;  %7024 = vmatprep.subr.mxu1 %v7581_v29 }
 0x462   :  { %7020 = vmatpush3.msra.mxu0 %v1176_v3  ;;  %7025 = vmatpush3.msra.mxu1 %v1177_v4 }
 0x463   :  { %7021 = vmatprep.mubr.msk.f32.mxu0 %vm7582_vm1, %v7581_v29  ;;  %7026 = vmatprep.mubr.msk.f32.mxu1 %vm7582_vm1, %v7581_v29 }
 0x464   :  { %7022 = vmatmul.mubr.msk.f32.vlgmr.msra.gmra.mrb[14].mxu0 %vm1178_vm2, %v1872_v34  ;;  %7027 = vmatmul.mubr.msk.f32.vlgmr.msra.gmra.mrb[18].mxu1 %vm1178_vm2, %v1874_v57 }
 0x4ea   :  { %v1944_v20 = vpop.f32.mrb[8].mxu0 }
 0x4eb   :  { %v2017_v26 = vpop.f32.mrb[12].mxu1  ;;  %v6993_v5 = vpop.f32.mrb[9].mxu0 }
 0x4ec   :  { %v6998_v7 = vpop.f32.mrb[13].mxu1 }
 0x4ed   :  { %v83_v7 = vld [vmem:[#allocation2 + $0x20] sm:$0xff] }
 0x4ee   :  { %v2090_v8 = vpop.f32.mrb[10].mxu0 }
 0x4ef   :  { %v2459_v33 = vcombine.low %v1944_v20, %v2090_v8  ;;  %v2460_v9 = vcombine.high %v1944_v20, %v2090_v8  ;;  %v7003_v0 = vpop.f32.mrb[11].mxu0  ;;  %v84_v8 = vld [vmem:[#allocation2 + $0x28] sm:$0xff] }
 0x4f1   :  { %v2467_v13 = vrot.slane %v2459_v33, %v7726_v38  ;;  %v2474_v14 = vrot.slane %v2460_v9, %v7726_v38  ;;  %v7264_v33 = vpack.c.bf16 %v84_v8, %v83_v7  ;;  %v8083_v8 = vld [vmem:[%s8727_s1 + $0x8] sm:$0xff] }
 0x4f2   :  { %v2163_v2 = vpop.f32.mrb[14].mxu1 }
 0x4f3   :  { %v2475_v55 = vcombine.low %v2017_v26, %v2163_v2  ;;  %v2476_v6 = vcombine.high %v2017_v26, %v2163_v2  ;;  %v7008_v11 = vpop.f32.mrb[15].mxu1  ;;  %7265 = vmatprep.subr.bf16.mxu1 %v7264_v33 }
 0x4f4   :  { %7267 = vmatpush3.bf16.msra.mxu1 %v7264_v33  ;;  %v76_v33 = vld [vmem:[%s8729_s3 + $0x8] sm:$0xff] }
 0x4f5   :  { %v2483_v16 = vrot.slane %v2475_v55, %v7726_v38  ;;  %v2490_v17 = vrot.slane %v2476_v6, %v7726_v38 }
 0x4f7   :  { %v2491_v18 = vcombine.low %v2467_v13, %v2483_v16  ;;  %v2492_v19 = vcombine.high %v2467_v13, %v2483_v16  ;;  %v2507_v21 = vcombine.low %v2474_v14, %v2490_v17  ;;  %v2508_v22 = vcombine.high %v2474_v14, %v2490_v17  ;;  %v85_v16 = vld [vmem:[#allocation2 + $0x30] sm:$0xff]  ;;  %v86_v17 = vld [vmem:[#allocation2 + $0x38] sm:$0xff] }
 0x4f9   :  { %v2499_v23 = vrot.slane %v2491_v18, %v7732_v48  ;;  %v2506_v15 = vrot.slane %v2492_v19, %v7732_v48  ;;  %v2515_v24 = vrot.slane %v2507_v21, %v7732_v48  ;;  %v2522_v12 = vrot.slane %v2508_v22, %v7732_v48 }
 0x4fa   :  { %v7268_v18 = vpack.c.bf16 %v86_v17, %v85_v16 }
 0x4fb   :  { %v2595_v25 = vcombine.low %v2499_v23, %v2506_v15  ;;  %v6688_v27 = vcombine.high %v2499_v23, %v2506_v15  ;;  %v2611_v28 = vcombine.low %v2515_v24, %v2522_v12  ;;  %v6689_v30 = vcombine.high %v2515_v24, %v2522_v12 }
 0x4fc   :  { %7269 = vmatprep.subr.bf16.mxu1 %v7268_v18 }
 0x4fd   :  { %v2602_v31 = vrot.slane %v2595_v25, %v7726_v38  ;;  %v2610_v10 = vrot.slane %v6688_v27, %v7726_v38  ;;  %v2618_v32 = vrot.slane %v2611_v28, %v7726_v38  ;;  %v2626_v35 = vrot.slane %v6689_v30, %v7726_v38  ;;  %7271 = vmatpush3.bf16.msra.mxu1 %v7268_v18 }
 0x4ff   :  { %v2627_v36 = vcombine.low %v2602_v31, %v2610_v10  ;;  %v2643_v37 = vcombine.low %v2618_v32, %v2626_v35  ;;  %v2628_v39 = vcombine.high %v2602_v31, %v2610_v10  ;;  %v2644_v40 = vcombine.high %v2618_v32, %v2626_v35 }
 0x501   :  { %v8018_v41 = vrot.slane %v2627_v36, %v7732_v48  ;;  %v8021_v42 = vrot.slane %v2643_v37, %v7732_v48  ;;  %v2642_v43 = vrot.slane %v2628_v39, %v7732_v48  ;;  %v2658_v44 = vrot.slane %v2644_v40, %v7732_v48 }
 0x503   :  { %v2660_v45 = vcombine.high %v8018_v41, %v8021_v42  ;;  %v2659_v47 = vcombine.low %v8018_v41, %v8021_v42  ;;  %v2661_v49 = vcombine.low %v2642_v43, %v2658_v44  ;;  %v2662_v51 = vcombine.high %v2642_v43, %v2658_v44  ;;  %v6692_v41 = vld [vmem:[#allocation5 + $0x1] ss:$0 sm:$0xff] }
 0x505   :  { %2733 = vrot.lane.b32.xlu0 %v2660_v45, %s7573_s28 }
 0x509   :  { %2741 = vrot.lane.b32.xlu0 %v2661_v49, %s7575_s18 }
 0x50d   :  { %2749 = vrot.lane.b32.xlu0 %v2662_v51, %s7585_s30 }
 0x533   :  { %v2236_v52 = vpop.f32.mrb[12].mxu0  ;;  %v2309_v53 = vpop.f32.mrb[16].mxu1 }
 0x534   :  { %v7013_v50 = vpop.f32.mrb[13].mxu0  ;;  %v7018_v54 = vpop.f32.mrb[17].mxu1 }
 0x537   :  { %v2382_v58 = vpop.f32.mrb[14].mxu0  ;;  %v2455_v60 = vpop.f32.mrb[18].mxu1 }
 0x538   :  { %v2527_v61 = vcombine.low %v2236_v52, %v2382_v58  ;;  %v2528_v62 = vcombine.high %v2236_v52, %v2382_v58  ;;  %v2543_v59 = vcombine.low %v2309_v53, %v2455_v60  ;;  %v2544_v63 = vcombine.high %v2309_v53, %v2455_v60  ;;  %v7023_v1 = vpop.f32.mrb[15].mxu0  ;;  %v7028_v46 = vpop.f32.mrb[19].mxu1 }
 0x53a   :  { %v2535_v56 = vrot.slane %v2527_v61, %v7726_v38  ;;  %v2542_v3 = vrot.slane %v2528_v62, %v7726_v38  ;;  %v2551_v4 = vrot.slane %v2543_v59, %v7726_v38  ;;  %v2558_v34 = vrot.slane %v2544_v63, %v7726_v38  ;;  %v7493_v61 = vld [vmem:[%s8726_s0 + $0x8] sm:$0xff]  ;;  %v7494_v59 = vld [vmem:[%s8726_s0] sm:$0xff] }
 0x53c   :  { %v2559_v57 = vcombine.low %v2535_v56, %v2551_v4  ;;  %v2560_v20 = vcombine.high %v2535_v56, %v2551_v4  ;;  %v2575_v26 = vcombine.low %v2542_v3, %v2558_v34  ;;  %v2576_v5 = vcombine.high %v2542_v3, %v2558_v34  ;;  %v91_v56 = vld [vmem:[#allocation2 + $0x60] sm:$0xff]  ;;  %v92_v3 = vld [vmem:[#allocation2 + $0x68] sm:$0xff]  ;;  %v93_v4 = vld [vmem:[#allocation2 + $0x70] sm:$0xff] }
 0x53d   :  { %v7280_v34 = vpack.c.bf16 %v92_v3, %v91_v56  ;;  %v7496_v3 = vld [vmem:[%s8728_s2 + $0x8] sm:$0xff] }
 0x53e   :  { %v2567_v9 = vrot.slane %v2559_v57, %v7732_v48  ;;  %v2574_v0 = vrot.slane %v2560_v20, %v7732_v48  ;;  %v2583_v2 = vrot.slane %v2575_v26, %v7732_v48  ;;  %v2590_v55 = vrot.slane %v2576_v5, %v7732_v48  ;;  %v94_v57 = vld [vmem:[#allocation2 + $0x78] sm:$0xff]  ;;  %v8073_v20 = vld [vmem:[%s8727_s1] sm:$0xff] }
 0x53f   :  { %v75_v26 = vld [vmem:[%s8729_s3] sm:$0xff]  ;;  %v7284_v5 = vpack.c.bf16 %v94_v57, %v93_v4  ;;  %7281 = vmatprep.subr.bf16.mxu0 %v7280_v34 }
 0x540   :  { %v2663_v6 = vcombine.low %v2567_v9, %v2574_v0  ;;  %v6690_v11 = vcombine.high %v2567_v9, %v2574_v0  ;;  %v2679_v13 = vcombine.low %v2583_v2, %v2590_v55  ;;  %v6691_v14 = vcombine.high %v2583_v2, %v2590_v55  ;;  %7283 = vmatpush3.bf16.msra.mxu0 %v7280_v34 }
 0x541   :  { %v2897_v7 = vadd.f32 %v75_v26, %v8073_v20  ;;  %7285 = vmatprep.subr.bf16.mxu0 %v7284_v5  ;;  %v2898_v9 = vadd.f32 %v76_v33, %v8083_v8 }
 0x542   :  { %v2670_v19 = vrot.slane %v2663_v6, %v7726_v38  ;;  %v2678_v21 = vrot.slane %v6690_v11, %v7726_v38  ;;  %v2686_v22 = vrot.slane %v2679_v13, %v7726_v38  ;;  %v2694_v23 = vrot.slane %v6691_v14, %v7726_v38 }
 0x543   :  { %7059 = vmatprep.mubr.msk.f32.mxu0 %vm129_vm0, %v2897_v7 }
 0x544   :  { %v2695_v15 = vcombine.low %v2670_v19, %v2678_v21  ;;  %v2711_v24 = vcombine.low %v2686_v22, %v2694_v23  ;;  %v2696_v12 = vcombine.high %v2670_v19, %v2678_v21  ;;  %v2712_v25 = vcombine.high %v2686_v22, %v2694_v23  ;;  %7287 = vmatpush3.bf16.msra.mxu0 %v7284_v5  ;;  %v87_v19 = vld [vmem:[#allocation2 + $0x40] sm:$0xff]  ;;  %v88_v21 = vld [vmem:[#allocation2 + $0x48] sm:$0xff]  ;;  %v8095_v23 = vld [vmem:[%s8727_s1 + $0x10] sm:$0xff] }
 0x545   :  { %v7272_v22 = vpack.c.bf16 %v88_v21, %v87_v19 }
 0x546   :  { %v2703_v27 = vrot.slane %v2695_v15, %v7732_v48  ;;  %v2719_v28 = vrot.slane %v2711_v24, %v7732_v48  ;;  %v2710_v30 = vrot.slane %v2696_v12, %v7732_v48  ;;  %v2726_v31 = vrot.slane %v2712_v25, %v7732_v48  ;;  %v77_v15 = vld [vmem:[%s8729_s3 + $0x10] sm:$0xff]  ;;  %v90_v25 = vld [vmem:[#allocation2 + $0x58] sm:$0xff] }
 0x547   :  { %7060 = vmatmul.mubr.msk.f32.vlgmr.msra.gmra.mrb[16].mxu0 %vm129_vm0, %v2898_v9  ;;  %v89_v24 = vld [vmem:[#allocation2 + $0x50] sm:$0xff]  ;;  %7273 = vmatprep.subr.bf16.mxu1 %v7272_v22  ;;  %v2899_v12 = vadd.f32 %v77_v15, %v8095_v23 }
 0x548   :  { %v2728_v10 = vcombine.high %v2703_v27, %v2719_v28  ;;  %v2727_v32 = vcombine.low %v2703_v27, %v2719_v28  ;;  %v2729_v35 = vcombine.low %v2710_v30, %v2726_v31  ;;  %v2730_v36 = vcombine.high %v2710_v30, %v2726_v31  ;;  %v72_v28 = vld [vmem:[%s8727_s1 + $0x18] sm:$0xff] }
 0x549   :  { %v7276_v27 = vpack.c.bf16 %v90_v25, %v89_v24  ;;  %v78_v30 = vld [vmem:[%s8729_s3 + $0x18] sm:$0xff]  ;;  %7062 = vmatprep.mubr.msk.f32.mxu0 %vm129_vm0, %v2899_v12 }
 0x54a   :  { %2735 = vrot.lane.b32.xlu1 %v2728_v10, %s7573_s28  ;;  %v2900_v31 = vadd.f32 %v78_v30, %v72_v28  ;;  %v8111_v10 = vld [vmem:[#allocation5 + $0x3] ss:$0 sm:$0xff] }
 0x54c   :  { %7063 = vmatmul.mubr.msk.f32.gmra.mrb[18].mxu0 %vm129_vm0, %v2900_v31 }
 0x54d   :  { %7083 = vmatprep.mubr.msk.f32.mxu0 %vm7582_vm1, %v7581_v29 }
 0x54e   :  { %2743 = vrot.lane.b32.xlu1 %v2729_v35, %s7575_s18 }
 0x552   :  { %2751 = vrot.lane.b32.xlu1 %v2730_v36, %s7585_s30 }
 0x577   :  { %v2734_v37 = vpop.permute.xlu0 %2733 }
 0x578   :  { %v2755_v40 = vsel %vm1178_vm2, %v2659_v47, %v2734_v37 }
 0x57b   :  { %v2742_v39 = vpop.permute.xlu0 %2741 }
 0x57c   :  { %v2758_v43 = vsel %vm2757_vm3, %v2755_v40, %v2742_v39  ;;  %v95_v39 = vld [vmem:[#allocation2 + $0x80] sm:$0xff]  ;;  %v96_v40 = vld [vmem:[#allocation2 + $0x88] sm:$0xff] }
 0x57f   :  { %v2750_v44 = vpop.permute.xlu0 %2749 }
 0x580   :  { %v2761_v45 = vsel %vm2760_vm4, %v2758_v43, %v2750_v44  ;;  %v7288_v43 = vpack.c.bf16 %v96_v40, %v95_v39 }
 0x581   :  { %7037 = vmatprep.mubr.msk.f32.mxu1 %vm129_vm0, %v2761_v45 }
 0x5bc   :  { %v2736_v49 = vpop.permute.xlu1 %2735 }
 0x5bd   :  { %v2756_v52 = vsel %vm1178_vm2, %v2727_v32, %v2736_v49 }
 0x5c0   :  { %v2744_v51 = vpop.permute.xlu1 %2743 }
 0x5c1   :  { %v2759_v53 = vsel %vm2757_vm3, %v2756_v52, %v2744_v51 }
 0x5c4   :  { %v2752_v50 = vpop.permute.xlu1 %2751 }
 0x5c5   :  { %v2762_v54 = vsel %vm2760_vm4, %v2759_v53, %v2752_v50 }
 0x5c6   :  { %7038 = vmatmul.mubr.msk.f32.vlgmr.msra.gmra.mrb[20].mxu1 %vm129_vm0, %v2762_v54  ;;  %v6695_v54 = vld [vmem:[#allocation5 + $0x6] ss:$0 sm:$0xff] }
 0x5c7   :  { %7275 = vmatpush3.bf16.msra.mxu1 %v7272_v22 }
 0x5c8   :  { %7277 = vmatprep.subr.bf16.mxu1 %v7276_v27 }
 0x5cb   :  { %7279 = vmatpush3.bf16.msra.mxu1 %v7276_v27 }
 0x5cc   :  { %7289 = vmatprep.subr.bf16.mxu1 %v7288_v43 }
 0x61a   :  { %v7061_v32 = vpop.f32.mrb[16].mxu0 }
 0x61b   :  { %v8114_v35 = vadd.f32 %v7061_v32, %v8111_v10  ;;  %v3072_v36 = vpop.f32.mrb[17].mxu0 }
 0x61c   :  { %v3073_v37 = vadd.f32 %v8111_v10, %v3072_v36 }
 0x699   :  { %v7039_v42 = vpop.f32.mrb[20].mxu1 }
 0x69a   :  { %v2847_v47 = vadd.f32 %v7039_v42, %v6692_v41  ;;  %v2841_v58 = vpop.f32.mrb[21].mxu1  ;;  %v6696_v42 = vld [vmem:[#allocation5 + $0x7] ss:$0 sm:$0xff] }
 0x69b   :  { %v2842_v60 = vadd.f32 %v6692_v41, %v2841_v58 }
 0x69c   :  { %v2851_v62 = vadd.f32 %v7493_v61, %v2847_v47 }
 0x69d   :  { %v2850_v63 = vadd.f32 %v7494_v59, %v2842_v60  ;;  %v7495_v59 = vld [vmem:[%s8728_s2] sm:$0xff] }
 0x69e   :  { %v2855_v1 = vsel %vm129_vm0, %v2851_v62, 0.0 }
 0x69f   :  { %2856 = vadd.xlane.f32.xlu1 %v2855_v1  ;;  %v2852_v46 = vsel %vm129_vm0, %v2850_v63, 0.0  ;;  %v97_v1 = vld [vmem:[#allocation2 + $0x90] sm:$0xff] }
 0x6a0   :  { %2853 = vadd.xlane.f32.xlu0 %v2852_v46  ;;  %v98_v46 = vld [vmem:[#allocation2 + $0x98] sm:$0xff] }
 0x6a1   :  { %v7292_v34 = vpack.c.bf16 %v98_v46, %v97_v1 }
 0x6b0   :  { %3490 = vrot.lane.b32.xlu1 %v3073_v37, %s7578_s26 }
 0x6b4   :  { %3502 = vrot.lane.b32.xlu1 %v3073_v37, %s7579_s29 }
 0x6b8   :  { %3504 = vrot.lane.b32.xlu1 %v8114_v35, %s7579_s29 }
 0x6bc   :  { %3516 = vrot.lane.b32.xlu1 %v8114_v35, %s7577_s25 }
 0x72c   :  { %v2857_v0 = vpop.xlane.xlu1 %2856 }
 0x72d   :  { %v2860_v2 = vmul.f32 0.03125, %v2857_v0  ;;  %v2854_v55 = vpop.xlane.xlu0 %2853 }
 0x72e   :  { %v2859_v6 = vmul.f32 0.03125, %v2854_v55 }
 0x72f   :  { %v2862_v11 = vsub.f32 %v2851_v62, %v2860_v2 }
 0x730   :  { %v2861_v13 = vsub.f32 %v2850_v63, %v2859_v6  ;;  %v3491_v26 = vpop.permute.xlu1 %3490 }
 0x731   :  { %v2864_v17 = vmul.f32 %v2862_v11, %v2862_v11 }
 0x732   :  { %v2863_v14 = vmul.f32 %v2861_v13, %v2861_v13 }
 0x733   :  { %v2868_v18 = vsel %vm129_vm0, %v2864_v17, 0.0 }
 0x734   :  { %v2865_v16 = vsel %vm129_vm0, %v2863_v14, 0.0  ;;  %v3503_v7 = vpop.permute.xlu1 %3502 }
 0x735   :  { %2866 = vadd.xlane.f32.xlu0 %v2865_v16  ;;  %v3527_v0 = vcombine.high %v3073_v37, %v3503_v7 }
 0x737   :  { %v3541_v6 = vrot.slane %v3527_v0, %v7726_v38 }
 0x739   :  { %2869 = vadd.xlane.f32.xlu0 %v2868_v18 }
 0x74f   :  { %3492 = vrot.lane.b32.xlu0 %v8114_v35, %s7578_s26 }
 0x753   :  { %3514 = vrot.lane.b32.xlu0 %v3073_v37, %s7577_s25 }
 0x7c2   :  { %v2867_v44 = vpop.xlane.xlu0 %2866 }
 0x7c3   :  { %v2871_v45 = vmul.f32 0.03125, %v2867_v44 }
 0x7c5   :  { %v2873_v49 = vadd.f32 1e-05, %v2871_v45 }
 0x7c6   :  { %v2870_v51 = vpop.xlane.xlu0 %2869 }
 0x7c7   :  { %7449 = vrsqrt.f32 %v2873_v49  ;;  %v2872_v52 = vmul.f32 0.03125, %v2870_v51 }
 0x7c9   :  { %v2874_v53 = vadd.f32 1e-05, %v2872_v52 }
 0x7ca   :  { %v3493_v57 = vpop.permute.xlu0 %3492 }
 0x7cb   :  { %7451 = vrsqrt.f32 %v2874_v53 }
 0x7ce   :  { %v3515_v5 = vpop.permute.xlu0 %3514 }
 0x7cf   :  { %v3542_v33 = vcombine.low %v3491_v26, %v3515_v5  ;;  %v3543_v9 = vcombine.high %v3491_v26, %v3515_v5 }
 0x7d1   :  { %v7450_v50 = vpop.eup %7449  ;;  %v3550_v2 = vrot.slane %v3542_v33, %v7726_v38 }
 0x7d2   :  { %v2877_v41 = vmul.f32 %v7450_v50, %v2861_v13 }
 0x7d4   :  { %v2885_v47 = vmul.f32 %v6695_v54, %v2877_v41 }
 0x7d5   :  { %v7452_v58 = vpop.eup %7451 }
 0x7d6   :  { %v2878_v60 = vmul.f32 %v7452_v58, %v2862_v11  ;;  %v2893_v61 = vadd.f32 %v6696_v42, %v2885_v47  ;;  %v3505_v11 = vpop.permute.xlu1 %3504 }
 0x7d7   :  { %v3594_v13 = vcombine.low %v8114_v35, %v3505_v11  ;;  %v3595_v14 = vcombine.high %v8114_v35, %v3505_v11 }
 0x7d8   :  { %v2886_v62 = vmul.f32 %v6695_v54, %v2878_v60  ;;  %v2895_v63 = vadd.f32 %v7495_v59, %v2893_v61 }
 0x7d9   :  { %v3609_v15 = vrot.slane %v3595_v14, %v7726_v38 }
 0x7da   :  { %v2894_v56 = vadd.f32 %v6696_v42, %v2886_v62  ;;  %7048 = vmatprep.mubr.msk.f32.mxu1 %vm129_vm0, %v2895_v63  ;;  %v3517_v24 = vpop.permute.xlu1 %3516 }
 0x7db   :  { %v3610_v27 = vcombine.low %v3493_v57, %v3517_v24 }
 0x7dc   :  { %v2896_v4 = vadd.f32 %v7496_v3, %v2894_v56 }
 0x7dd   :  { %v3618_v36 = vrot.slane %v3610_v27, %v7726_v38 }
 0x7de   :  { %7049 = vmatmul.mubr.msk.f32.vlgmr.msra.gmra.mrb[22].mxu1 %vm129_vm0, %v2896_v4 }
 0x7df   :  { %7291 = vmatpush3.bf16.msra.mxu1 %v7288_v43  ;;  %7073 = vmatprep.mubr.msk.f32.mxu1 %vm129_vm0, %v8073_v20  ;;  %v3526_v20 = vcombine.low %v3073_v37, %v3503_v7  ;;  %v7064_v7 = vpop.f32.mrb[18].mxu0 }
 0x7e0   :  { %7293 = vmatprep.subr.bf16.mxu1 %v7292_v34  ;;  %v8174_v0 = vadd.f32 %v7064_v7, %v8111_v10 }
 0x7e1   :  { %v3534_v55 = vrot.slane %v3526_v20, %v7726_v38 }
 0x7e2   :  { %3496 = vrot.lane.b32.xlu0 %v8174_v0, %s7578_s26 }
 0x7e3   :  { %7295 = vmatpush3.bf16.msra.mxu1 %v7292_v34  ;;  %v3558_v16 = vcombine.low %v3534_v55, %v3550_v2  ;;  %v3559_v17 = vcombine.high %v3534_v55, %v3550_v2  ;;  %v3082_v2 = vpop.f32.mrb[19].mxu0 }
 0x7e5   :  { %v3566_v21 = vrot.slane %v3558_v16, %v7732_v48  ;;  %v3573_v22 = vrot.slane %v3559_v17, %v7732_v48 }
 0x7e6   :  { %7074 = vmatmul.mubr.msk.f32.vlgmr.msra.gmra.mrb[24].mxu1 %vm129_vm0, %v8083_v8  ;;  %v3557_v8 = vrot.slane %v3543_v9, %v7726_v38 }
 0x7e7   :  { %7076 = vmatprep.mubr.msk.f32.mxu1 %vm129_vm0, %v8095_v23  ;;  %v3602_v23 = vrot.slane %v3594_v13, %v7726_v38  ;;  %v3798_v30 = vcombine.low %v3566_v21, %v3573_v22  ;;  %v6714_v31 = vcombine.high %v3566_v21, %v3573_v22 }
 0x7e8   :  { %v3574_v18 = vcombine.low %v3541_v6, %v3557_v8  ;;  %v3575_v19 = vcombine.high %v3541_v6, %v3557_v8  ;;  %v8177_v8 = vadd.f32 %v8111_v10, %v3082_v2 }
 0x7e9   :  { %v3805_v39 = vrot.slane %v3798_v30, %v7726_v38  ;;  %v3813_v40 = vrot.slane %v6714_v31, %v7726_v38  ;;  %v3626_v45 = vcombine.low %v3602_v23, %v3618_v36  ;;  %v3627_v49 = vcombine.high %v3602_v23, %v3618_v36 }
 0x7ea   :  { %7077 = vmatmul.mubr.msk.f32.gmra.mrb[26].mxu1 %vm129_vm0, %v72_v28  ;;  %v3582_v12 = vrot.slane %v3574_v18, %v7732_v48  ;;  %v3589_v25 = vrot.slane %v3575_v19, %v7732_v48  ;;  %v3611_v28 = vcombine.high %v3493_v57, %v3517_v24  ;;  %3494 = vrot.lane.b32.xlu1 %v8177_v8, %s7578_s26  ;;  %v7586_v18 = vmov 0.0|0.0  }
 0x7eb   :  { %7090 = vmatprep.mubr.msk.f32.mxu1 %vm7582_vm1, %v7581_v29  ;;  %v3831_v53 = vcombine.high %v3805_v39, %v3813_v40  ;;  %v3634_v54 = vrot.slane %v3626_v45, %v7732_v48  ;;  %v3641_v41 = vrot.slane %v3627_v49, %v7732_v48  ;;  %v3830_v4 = vcombine.low %v3805_v39, %v3813_v40 }
 0x7ec   :  { %v3814_v32 = vcombine.low %v3582_v12, %v3589_v25  ;;  %v6715_v35 = vcombine.high %v3582_v12, %v3589_v25  ;;  %v3625_v37 = vrot.slane %v3611_v28, %v7726_v38  ;;  %7296 = vmatprep.subr.bf16.mxu0 %v7586_v18  ;;  %7300 = vmatprep.subr.bf16.mxu1 %v7586_v18  ;;  %v6697_v28 = vld [vmem:[#allocation5 + $0x2] ss:$0 sm:$0xff] }
 0x7ed   :  { %v3866_v58 = vcombine.low %v3634_v54, %v3641_v41  ;;  %v6716_v60 = vcombine.high %v3634_v54, %v3641_v41  ;;  %v3838_v5 = vrot.slane %v3830_v4, %v7732_v48  ;;  %v3845_v17 = vrot.slane %v3831_v53, %v7732_v48 }
 0x7ee   :  { %v3821_v43 = vrot.slane %v3814_v32, %v7726_v38  ;;  %v3829_v44 = vrot.slane %v6715_v35, %v7726_v38  ;;  %v3642_v51 = vcombine.low %v3609_v15, %v3625_v37  ;;  %v3643_v52 = vcombine.high %v3609_v15, %v3625_v37 }
 0x7ef   :  { %v3873_v59 = vrot.slane %v3866_v58, %v7726_v38  ;;  %v3881_v63 = vrot.slane %v6716_v60, %v7726_v38 }
 0x7f0   :  { %v3847_v50 = vcombine.high %v3821_v43, %v3829_v44  ;;  %v3650_v42 = vrot.slane %v3642_v51, %v7732_v48  ;;  %v3657_v47 = vrot.slane %v3643_v52, %v7732_v48  ;;  %v3846_v26 = vcombine.low %v3821_v43, %v3829_v44 }
 0x7f1   :  { %v3899_v56 = vcombine.high %v3873_v59, %v3881_v63  ;;  %v3898_v34 = vcombine.low %v3873_v59, %v3881_v63 }
 0x7f2   :  { %v3882_v61 = vcombine.low %v3650_v42, %v3657_v47  ;;  %v6717_v62 = vcombine.high %v3650_v42, %v3657_v47  ;;  %v3854_v20 = vrot.slane %v3846_v26, %v7732_v48  ;;  %v3861_v22 = vrot.slane %v3847_v50, %v7732_v48 }
 0x7f3   :  { %v3906_v33 = vrot.slane %v3898_v34, %v7732_v48  ;;  %v3913_v19 = vrot.slane %v3899_v56, %v7732_v48 }
 0x7f4   :  { %v3889_v1 = vrot.slane %v3882_v61, %v7726_v38  ;;  %v3897_v46 = vrot.slane %v6717_v62, %v7726_v38  ;;  %v3862_v55 = vcombine.low %v3838_v5, %v3854_v20  ;;  %v3863_v11 = vcombine.high %v3838_v5, %v3854_v20 }
 0x7f5   :  { %v3864_v23 = vcombine.low %v3845_v17, %v3861_v22  ;;  %v3865_v24 = vcombine.high %v3845_v17, %v3861_v22 }
 0x7f6   :  { %v3915_v3 = vcombine.high %v3889_v1, %v3897_v46  ;;  %v3914_v57 = vcombine.low %v3889_v1, %v3897_v46 }
 0x7f8   :  { %v3922_v9 = vrot.slane %v3914_v57, %v7732_v48  ;;  %v3929_v21 = vrot.slane %v3915_v3, %v7732_v48 }
 0x7fa   :  { %v3930_v6 = vcombine.low %v3906_v33, %v3922_v9  ;;  %v3931_v13 = vcombine.high %v3906_v33, %v3922_v9  ;;  %v3932_v15 = vcombine.low %v3913_v19, %v3929_v21  ;;  %v3933_v12 = vcombine.high %v3913_v19, %v3929_v21 }
 0x7fc   :  { %v7297_v14 = vpack.c.bf16 %v3930_v6, %v3862_v55  ;;  %v7301_v16 = vpack.c.bf16 %v3931_v13, %v3863_v11  ;;  %v8201_v25 = vpack.c.bf16 %v3932_v15, %v3864_v23  ;;  %v8203_v27 = vpack.c.bf16 %v3933_v12, %v3865_v24 }
 0x7fe   :  { %7299 = vmatpush3.bf16.xpose.msk.msra.mxu0 %vm8188_vm5, %v7297_v14  ;;  %7303 = vmatpush3.bf16.xpose.msk.msra.mxu1 %vm8188_vm5, %v7301_v16 }
 0x7ff   :  { %7304 = vmatprep.subr.bf16.mxu0 %v7586_v18  ;;  %7308 = vmatprep.subr.bf16.mxu1 %v7586_v18 }
 0x854   :  { %v8232_v44 = vpop.permute.xlu0 %3496 }
 0x85c   :  { %v3495_v43 = vpop.permute.xlu1 %3494 }
 0x8b1   :  { %v7050_v30 = vpop.f32.mrb[22].mxu1 }
 0x8b2   :  { %v2979_v31 = vpop.f32.mrb[23].mxu1  ;;  %v8214_v35 = vadd.f32 %v7050_v30, %v6697_v28 }
 0x8b3   :  { %v2980_v32 = vadd.f32 %v6697_v28, %v2979_v31 }
 0x8b5   :  { %3202 = vrot.lane.b32.xlu1 %v2980_v32, %s7579_s29  ;;  %3196 = vrot.lane.b32.xlu0 %v2980_v32, %s7578_s26 }
 0x8b9   :  { %3506 = vrot.lane.b32.xlu1 %v8177_v8, %s7579_s29  ;;  %3208 = vrot.lane.b32.xlu0 %v2980_v32, %s7577_s25  ;;  %v8224_v36 = vpop.f32.mrb[24].mxu1 }
 0x8ba   :  { %v8226_v37 = vpop.f32.mrb[25].mxu1 }
 0x8bd   :  { %3518 = vrot.lane.b32.xlu1 %v8177_v8, %s7577_s25  ;;  %3508 = vrot.lane.b32.xlu0 %v8174_v0, %s7579_s29  ;;  %v8228_v39 = vpop.f32.mrb[26].mxu1 }
 0x8be   :  { %v8230_v40 = vpop.f32.mrb[27].mxu1 }
 0x8c1   :  { %3198 = vrot.lane.b32.xlu1 %v8214_v35, %s7578_s26  ;;  %3520 = vrot.lane.b32.xlu0 %v8174_v0, %s7577_s25 }
 0x8c5   :  { %3210 = vrot.lane.b32.xlu1 %v8214_v35, %s7577_s25  ;;  %3204 = vrot.lane.b32.xlu0 %v8214_v35, %s7579_s29 }
 0x927   :  { %v3203_v45 = vpop.permute.xlu1 %3202  ;;  %v3197_v49 = vpop.permute.xlu0 %3196 }
 0x928   :  { %v3214_v51 = vcombine.low %v2980_v32, %v3203_v45  ;;  %v3215_v52 = vcombine.high %v2980_v32, %v3203_v45 }
 0x92a   :  { %v3222_v42 = vrot.slane %v3214_v51, %v7726_v38  ;;  %v3229_v47 = vrot.slane %v3215_v52, %v7726_v38 }
 0x92b   :  { %v3507_v53 = vpop.permute.xlu1 %3506  ;;  %v3209_v50 = vpop.permute.xlu0 %3208 }
 0x92c   :  { %v3230_v54 = vcombine.low %v3197_v49, %v3209_v50  ;;  %v3231_v41 = vcombine.high %v3197_v49, %v3209_v50  ;;  %v3662_v61 = vcombine.low %v8177_v8, %v3507_v53  ;;  %v3663_v62 = vcombine.high %v8177_v8, %v3507_v53 }
 0x92e   :  { %v3238_v58 = vrot.slane %v3230_v54, %v7726_v38  ;;  %v3245_v60 = vrot.slane %v3231_v41, %v7726_v38  ;;  %v3670_v33 = vrot.slane %v3662_v61, %v7726_v38  ;;  %v3677_v9 = vrot.slane %v3663_v62, %v7726_v38 }
 0x92f   :  { %v3519_v59 = vpop.permute.xlu1 %3518  ;;  %v3509_v34 = vpop.permute.xlu0 %3508 }
 0x930   :  { %v3246_v63 = vcombine.low %v3222_v42, %v3238_v58  ;;  %v3247_v1 = vcombine.high %v3222_v42, %v3238_v58  ;;  %v3262_v46 = vcombine.low %v3229_v47, %v3245_v60  ;;  %v3263_v56 = vcombine.high %v3229_v47, %v3245_v60 }
 0x931   :  { %v3678_v3 = vcombine.low %v3495_v43, %v3519_v59  ;;  %v3679_v4 = vcombine.high %v3495_v43, %v3519_v59  ;;  %v3730_v32 = vcombine.low %v8174_v0, %v3509_v34  ;;  %v3731_v43 = vcombine.high %v8174_v0, %v3509_v34 }
 0x932   :  { %v3254_v57 = vrot.slane %v3246_v63, %v7732_v48  ;;  %v3261_v26 = vrot.slane %v3247_v1, %v7732_v48  ;;  %v3270_v5 = vrot.slane %v3262_v46, %v7732_v48  ;;  %v3277_v7 = vrot.slane %v3263_v56, %v7732_v48 }
 0x933   :  { %v3686_v20 = vrot.slane %v3678_v3, %v7726_v38  ;;  %v3693_v2 = vrot.slane %v3679_v4, %v7726_v38  ;;  %v3199_v13 = vpop.permute.xlu1 %3198  ;;  %v3521_v31 = vpop.permute.xlu0 %3520  ;;  %v3738_v61 = vrot.slane %v3730_v32, %v7726_v38  ;;  %v3745_v62 = vrot.slane %v3731_v43, %v7726_v38 }
 0x934   :  { %v3350_v8 = vcombine.low %v3254_v57, %v3261_v26  ;;  %v6710_v55 = vcombine.high %v3254_v57, %v3261_v26  ;;  %v3366_v6 = vcombine.low %v3270_v5, %v3277_v7  ;;  %v6711_v11 = vcombine.high %v3270_v5, %v3277_v7 }
 0x935   :  { %v3694_v14 = vcombine.low %v3670_v33, %v3686_v20  ;;  %v3695_v16 = vcombine.high %v3670_v33, %v3686_v20  ;;  %v3710_v17 = vcombine.low %v3677_v9, %v3693_v2  ;;  %v3711_v19 = vcombine.high %v3677_v9, %v3693_v2 }
 0x936   :  { %v8249_v21 = vrot.slane %v3350_v8, %v7726_v38  ;;  %v8252_v22 = vrot.slane %v6710_v55, %v7726_v38  ;;  %v8255_v23 = vrot.slane %v3366_v6, %v7726_v38  ;;  %v8258_v15 = vrot.slane %v6711_v11, %v7726_v38 }
 0x937   :  { %v3702_v24 = vrot.slane %v3694_v14, %v7732_v48  ;;  %v3709_v12 = vrot.slane %v3695_v16, %v7732_v48  ;;  %v3718_v28 = vrot.slane %v3710_v17, %v7732_v48  ;;  %v3725_v30 = vrot.slane %v3711_v19, %v7732_v48  ;;  %v3211_v42 = vpop.permute.xlu1 %3210  ;;  %v3205_v26 = vpop.permute.xlu0 %3204 }
 0x938   :  { %v3382_v53 = vcombine.low %v8249_v21, %v8252_v22  ;;  %v3398_v50 = vcombine.low %v8255_v23, %v8258_v15  ;;  %v3746_v54 = vcombine.low %v8232_v44, %v3521_v31  ;;  %v3747_v41 = vcombine.high %v8232_v44, %v3521_v31 }
 0x939   :  { %v3934_v45 = vcombine.low %v3702_v24, %v3709_v12  ;;  %v6718_v49 = vcombine.high %v3702_v24, %v3709_v12  ;;  %v3950_v51 = vcombine.low %v3718_v28, %v3725_v30  ;;  %v6719_v52 = vcombine.high %v3718_v28, %v3725_v30 }
 0x93a   :  { %v3754_v59 = vrot.slane %v3746_v54, %v7726_v38  ;;  %v3761_v44 = vrot.slane %v3747_v41, %v7726_v38  ;;  %v3383_v63 = vcombine.high %v8249_v21, %v8252_v22  ;;  %v3399_v1 = vcombine.high %v8255_v23, %v8258_v15 }
 0x93b   :  { %v8273_v47 = vrot.slane %v3934_v45, %v7726_v38  ;;  %v8276_v0 = vrot.slane %v6718_v49, %v7726_v38  ;;  %v8279_v58 = vrot.slane %v3950_v51, %v7726_v38  ;;  %v8282_v60 = vrot.slane %v6719_v52, %v7726_v38 }
 0x93c   :  { %v3298_v46 = vcombine.low %v3199_v13, %v3211_v42  ;;  %v3299_v56 = vcombine.high %v3199_v13, %v3211_v42  ;;  %v3762_v3 = vcombine.low %v3738_v61, %v3754_v59  ;;  %v3763_v4 = vcombine.high %v3738_v61, %v3754_v59 }
 0x93d   :  { %v3778_v34 = vcombine.low %v3745_v62, %v3761_v44  ;;  %v3779_v57 = vcombine.high %v3745_v62, %v3761_v44  ;;  %v3390_v5 = vrot.slane %v3382_v53, %v7732_v48  ;;  %v3406_v7 = vrot.slane %v3398_v50, %v7732_v48 }
 0x93e   :  { %v3966_v33 = vcombine.low %v8273_v47, %v8276_v0  ;;  %v3982_v9 = vcombine.low %v8279_v58, %v8282_v60  ;;  %v3770_v20 = vrot.slane %v3762_v3, %v7732_v48  ;;  %v3777_v2 = vrot.slane %v3763_v4, %v7732_v48 }
 0x93f   :  { %v3786_v8 = vrot.slane %v3778_v34, %v7732_v48  ;;  %v3793_v55 = vrot.slane %v3779_v57, %v7732_v48  ;;  %v3306_v6 = vrot.slane %v3298_v46, %v7726_v38  ;;  %v3313_v11 = vrot.slane %v3299_v56, %v7726_v38 }
 0x940   :  { %v3282_v13 = vcombine.low %v8214_v35, %v3205_v26  ;;  %v3283_v14 = vcombine.high %v8214_v35, %v3205_v26  ;;  %v4002_v16 = vcombine.low %v3770_v20, %v3777_v2  ;;  %v6720_v17 = vcombine.high %v3770_v20, %v3777_v2 }
 0x941   :  { %v4018_v19 = vcombine.low %v3786_v8, %v3793_v55  ;;  %v6721_v21 = vcombine.high %v3786_v8, %v3793_v55  ;;  %v3414_v15 = vcombine.low %v3390_v5, %v3406_v7  ;;  %v3415_v24 = vcombine.high %v3390_v5, %v3406_v7 }
 0x942   :  { %v3290_v22 = vrot.slane %v3282_v13, %v7726_v38  ;;  %v3297_v23 = vrot.slane %v3283_v14, %v7726_v38  ;;  %v4009_v12 = vrot.slane %v4002_v16, %v7726_v38  ;;  %v4017_v28 = vrot.slane %v6720_v17, %v7726_v38 }
 0x943   :  { %v4025_v30 = vrot.slane %v4018_v19, %v7726_v38  ;;  %v4033_v31 = vrot.slane %v6721_v21, %v7726_v38  ;;  %7084 = vmatmul.mubr.msk.f32.vlgmr.msra.gmra.mrb[20].mxu0 %vm1178_vm2, %v3414_v15  ;;  %v3967_v49 = vcombine.high %v8273_v47, %v8276_v0  ;;  %v3974_v51 = vrot.slane %v3966_v33, %v7732_v48 }
 0x944   :  { %v3314_v32 = vcombine.low %v3290_v22, %v3306_v6  ;;  %v3315_v35 = vcombine.high %v3290_v22, %v3306_v6  ;;  %v3330_v43 = vcombine.low %v3297_v23, %v3313_v11  ;;  %v3331_v45 = vcombine.high %v3297_v23, %v3313_v11  ;;  %7091 = vmatmul.mubr.msk.f32.vlgmr.msra.gmra.mrb[28].mxu1 %vm1178_vm2, %v3415_v24 }
 0x945   :  { %v4034_v52 = vcombine.low %v4009_v12, %v4017_v28  ;;  %v4050_v53 = vcombine.low %v4025_v30, %v4033_v31  ;;  %7307 = vmatpush3.bf16.xpose.msk.msra.mxu0 %vm8188_vm5, %v8201_v25  ;;  %v3990_v47 = vrot.slane %v3982_v9, %v7732_v48  ;;  %v4035_v0 = vcombine.high %v4009_v12, %v4017_v28 }
 0x946   :  { %v3322_v50 = vrot.slane %v3314_v32, %v7732_v48  ;;  %v3329_v54 = vrot.slane %v3315_v35, %v7732_v48  ;;  %v3338_v41 = vrot.slane %v3330_v43, %v7732_v48  ;;  %v3345_v42 = vrot.slane %v3331_v45, %v7732_v48  ;;  %7311 = vmatpush3.bf16.xpose.msk.msra.mxu1 %vm8188_vm5, %v8203_v27 }
 0x947   :  { %v4042_v61 = vrot.slane %v4034_v52, %v7732_v48  ;;  %v4058_v62 = vrot.slane %v4050_v53, %v7732_v48  ;;  %7097 = vmatprep.mubr.msk.f32.mxu0 %vm7582_vm1, %v7581_v29  ;;  %v4051_v3 = vcombine.high %v4025_v30, %v4033_v31  ;;  %7104 = vmatprep.mubr.msk.f32.mxu1 %vm7582_vm1, %v7581_v29 }
 0x948   :  { %v3418_v59 = vcombine.low %v3322_v50, %v3329_v54  ;;  %v6712_v44 = vcombine.high %v3322_v50, %v3329_v54  ;;  %v3434_v46 = vcombine.low %v3338_v41, %v3345_v42  ;;  %v6713_v56 = vcombine.high %v3338_v41, %v3345_v42  ;;  %7312 = vmatprep.subr.bf16.mxu0 %v7586_v18 }
 0x949   :  { %v3397_v25 = vrot.slane %v3383_v63, %v7732_v48  ;;  %v3413_v4 = vrot.slane %v3399_v1, %v7732_v48  ;;  %7316 = vmatprep.subr.bf16.mxu1 %v7586_v18  ;;  %v3983_v5 = vcombine.high %v8279_v58, %v8282_v60  ;;  %v3998_v33 = vcombine.low %v3974_v51, %v3990_v47 }
 0x94a   :  { %v3425_v34 = vrot.slane %v3418_v59, %v7726_v38  ;;  %v3433_v27 = vrot.slane %v6712_v44, %v7726_v38  ;;  %v3441_v57 = vrot.slane %v3434_v46, %v7726_v38  ;;  %v3449_v26 = vrot.slane %v6713_v56, %v7726_v38 }
 0x94b   :  { %v3416_v7 = vcombine.low %v3397_v25, %v3413_v4  ;;  %v4066_v63 = vcombine.low %v4042_v61, %v4058_v62  ;;  %v4049_v1 = vrot.slane %v4035_v0, %v7732_v48  ;;  %v3417_v2 = vcombine.high %v3397_v25, %v3413_v4 }
 0x94c   :  { %v3450_v9 = vcombine.low %v3425_v34, %v3433_v27  ;;  %v3466_v20 = vcombine.low %v3441_v57, %v3449_v26  ;;  %v4065_v8 = vrot.slane %v4051_v3, %v7732_v48  ;;  %v3999_v6 = vcombine.high %v3974_v51, %v3990_v47 }
 0x94d   :  { %7098 = vmatmul.mubr.msk.f32.vlgmr.msra.gmra.mrb[22].mxu0 %vm1178_vm2, %v3416_v7  ;;  %v7313_v55 = vpack.c.bf16 %v4066_v63, %v3998_v33  ;;  %v4067_v11 = vcombine.high %v4042_v61, %v4058_v62  ;;  %7105 = vmatmul.mubr.msk.f32.vlgmr.msra.gmra.mrb[30].mxu1 %vm1178_vm2, %v3417_v2  ;;  %v3981_v58 = vrot.slane %v3967_v49, %v7732_v48 }
 0x94e   :  { %7111 = vmatprep.mubr.msk.f32.mxu0 %vm7582_vm1, %v7581_v29  ;;  %v3997_v60 = vrot.slane %v3983_v5, %v7732_v48  ;;  %7118 = vmatprep.mubr.msk.f32.mxu1 %vm7582_vm1, %v7581_v29  ;;  %v3458_v14 = vrot.slane %v3450_v9, %v7732_v48  ;;  %v3474_v16 = vrot.slane %v3466_v20, %v7732_v48 }
 0x94f   :  { %7315 = vmatpush3.bf16.xpose.msk.msra.mxu0 %vm8188_vm5, %v7313_v55  ;;  %v7317_v13 = vpack.c.bf16 %v4067_v11, %v3999_v6  ;;  %v4068_v17 = vcombine.low %v4049_v1, %v4065_v8  ;;  %v4069_v21 = vcombine.high %v4049_v1, %v4065_v8  ;;  %v3451_v22 = vcombine.high %v3425_v34, %v3433_v27 }
 0x950   :  { %7320 = vmatprep.subr.bf16.mxu0 %v7586_v18  ;;  %v4000_v19 = vcombine.low %v3981_v58, %v3997_v60  ;;  %v3467_v23 = vcombine.high %v3441_v57, %v3449_v26  ;;  %v3482_v15 = vcombine.low %v3458_v14, %v3474_v16  ;;  %v4001_v12 = vcombine.high %v3981_v58, %v3997_v60  ;;  %v6705_v26 = vld [vmem:[#allocation5 + $0x4] ss:$0 sm:$0xff] }
 0x951   :  { %7319 = vmatpush3.bf16.xpose.msk.msra.mxu1 %vm8188_vm5, %v7317_v13  ;;  %v3483_v28 = vcombine.high %v3458_v14, %v3474_v16  ;;  %v3465_v31 = vrot.slane %v3451_v22, %v7732_v48  ;;  %v8394_v5 = vadd.f32 %v6705_v26, %v8226_v37  ;;  %v8401_v7 = vadd.f32 %v8224_v36, %v6705_v26 }
 0x952   :  { %7324 = vmatprep.subr.bf16.mxu1 %v7586_v18  ;;  %v7321_v24 = vpack.c.bf16 %v4068_v17, %v4000_v19  ;;  %v7325_v30 = vpack.c.bf16 %v4069_v21, %v4001_v12  ;;  %v3481_v32 = vrot.slane %v3467_v23, %v7732_v48  ;;  %v8412_v37 = vadd.f32 %v8228_v39, %v6705_v26 }
 0x953   :  { %v8415_v33 = vadd.f32 %v6705_v26, %v8230_v40 }
 0x954   :  { %v3484_v35 = vcombine.low %v3465_v31, %v3481_v32  ;;  %v3485_v43 = vcombine.high %v3465_v31, %v3481_v32 }
 0x956   :  { %7112 = vmatmul.mubr.msk.f32.vlgmr.msra.gmra.mrb[24].mxu0 %vm1178_vm2, %v3482_v15 }
 0x957   :  { %7323 = vmatpush3.bf16.xpose.msk.msra.mxu0 %vm8188_vm5, %v7321_v24  ;;  %7125 = vmatprep.mubr.msk.f32.mxu0 %vm7582_vm1, %v7581_v29 }
 0x958   :  { %7119 = vmatmul.mubr.msk.f32.vlgmr.msra.gmra.mrb[32].mxu1 %vm1178_vm2, %v3483_v28  ;;  %7328 = vmatprep.subr.bf16.mxu0 %v7586_v18 }
 0x959   :  { %7327 = vmatpush3.bf16.xpose.msk.msra.mxu1 %vm8188_vm5, %v7325_v30  ;;  %7132 = vmatprep.mubr.msk.f32.mxu1 %vm7582_vm1, %v7581_v29 }
 0x95a   :  { %7331 = vmatprep.subr.bf16.mxu1 %v7586_v18 }
 0x95e   :  { %7126 = vmatmul.mubr.msk.f32.vlgmr.msra.gmra.mrb[26].mxu0 %vm1178_vm2, %v3484_v35 }
 0x95f   :  { %7139 = vmatprep.mubr.msk.f32.mxu0 %vm7582_vm1, %v7581_v29 }
 0x960   :  { %7133 = vmatmul.mubr.msk.f32.vlgmr.msra.gmra.mrb[34].mxu1 %vm1178_vm2, %v3485_v43 }
 0x961   :  { %7146 = vmatprep.mubr.msk.f32.mxu1 %vm7582_vm1, %v7581_v29 }
 0xa16   :  { %v4729_v45 = vpop.f32.mrb[20].mxu0 }
 0xa17   :  { %v4808_v10 = vpop.f32.mrb[28].mxu1  ;;  %v7085_v49 = vpop.f32.mrb[21].mxu0  ;;  %v5286_v51 = vsel %vm2757_vm3, %v4729_v45, -inf }
 0xa18   :  { %v7092_v52 = vpop.f32.mrb[29].mxu1  ;;  %v5289_v53 = vsel %vm2757_vm3, %v4808_v10, -inf  ;;  %5287 = vmax.xlane.f32.xlu0 %v5286_v51 }
 0xa19   :  { %5290 = vmax.xlane.f32.xlu1 %v5289_v53 }
 0xa20   :  { %v4887_v50 = vpop.f32.mrb[22].mxu0  ;;  %v4966_v54 = vpop.f32.mrb[30].mxu1 }
 0xa21   :  { %v7099_v41 = vpop.f32.mrb[23].mxu0  ;;  %v5292_v42 = vsel %vm2757_vm3, %v4887_v50, -inf  ;;  %v7106_v47 = vpop.f32.mrb[31].mxu1  ;;  %v5295_v0 = vsel %vm2757_vm3, %v4966_v54, -inf }
 0xa22   :  { %5293 = vmax.xlane.f32.xlu0 %v5292_v42 }
 0xa26   :  { %5296 = vmax.xlane.f32.xlu0 %v5295_v0 }
 0xa29   :  { %v5045_v61 = vpop.f32.mrb[24].mxu0 }
 0xa2a   :  { %v7113_v62 = vpop.f32.mrb[25].mxu0  ;;  %v5298_v59 = vsel %vm2757_vm3, %v5045_v61, -inf }
 0xa2b   :  { %v5124_v44 = vpop.f32.mrb[32].mxu1  ;;  %5299 = vmax.xlane.f32.xlu1 %v5298_v59 }
 0xa2c   :  { %v7120_v46 = vpop.f32.mrb[33].mxu1  ;;  %v5301_v56 = vsel %vm2757_vm3, %v5124_v44, -inf }
 0xa2d   :  { %5302 = vmax.xlane.f32.xlu0 %v5301_v56 }
 0xa31   :  { %v5203_v3 = vpop.f32.mrb[26].mxu0 }
 0xa32   :  { %v7127_v25 = vpop.f32.mrb[27].mxu0  ;;  %v5304_v4 = vsel %vm2757_vm3, %v5203_v3, -inf }
 0xa33   :  { %v8389_v34 = vpop.f32.mrb[34].mxu1  ;;  %5305 = vmax.xlane.f32.xlu1 %v5304_v4 }
 0xa34   :  { %v7134_v27 = vpop.f32.mrb[35].mxu1  ;;  %v5307_v57 = vsel %vm2757_vm3, %v8389_v34, -inf }
 0xa35   :  { %5308 = vmax.xlane.f32.xlu0 %v5307_v57 }
 0xa44   :  { %4074 = vrot.lane.b32.xlu1 %v8394_v5, %s7578_s26 }
 0xa48   :  { %4086 = vrot.lane.b32.xlu1 %v8394_v5, %s7579_s29 }
 0xa4b   :  { %4076 = vrot.lane.b32.xlu0 %v8401_v7, %s7578_s26 }
 0xa4c   :  { %4088 = vrot.lane.b32.xlu1 %v8401_v7, %s7579_s29 }
 0xa4f   :  { %4098 = vrot.lane.b32.xlu0 %v8394_v5, %s7577_s25 }
 0xa50   :  { %4100 = vrot.lane.b32.xlu1 %v8401_v7, %s7577_s25 }
 0xa53   :  { %4080 = vrot.lane.b32.xlu0 %v8412_v37, %s7578_s26 }
 0xa54   :  { %4078 = vrot.lane.b32.xlu1 %v8415_v33, %s7578_s26 }
 0xa57   :  { %4102 = vrot.lane.b32.xlu0 %v8415_v33, %s7577_s25 }
 0xa58   :  { %4090 = vrot.lane.b32.xlu1 %v8415_v33, %s7579_s29 }
 0xa5c   :  { %4092 = vrot.lane.b32.xlu1 %v8412_v37, %s7579_s29 }
 0xaa5   :  { %v5288_v36 = vpop.xlane.xlu0 %5287 }
 0xaa6   :  { %v5291_v39 = vpop.xlane.xlu1 %5290  ;;  %v5310_v63 = vsub.f32 %v4729_v45, %v5288_v36 }
 0xaa7   :  { %v5311_v40 = vsub.f32 %v4808_v10, %v5291_v39 }
 0xaa8   :  { %v5318_v1 = vmul.f32 1.442695, %v5310_v63 }
 0xaa9   :  { %v5320_v9 = vmul.f32 1.442695, %v5311_v40 }
 0xaaa   :  { %7453 = vpow2.f32 %v5318_v1 }
 0xaab   :  { %7455 = vpow2.f32 %v5320_v9 }
 0xaaf   :  { %v5294_v20 = vpop.xlane.xlu0 %5293 }
 0xab0   :  { %v5312_v2 = vsub.f32 %v4887_v50, %v5294_v20 }
 0xab2   :  { %v5322_v8 = vmul.f32 1.442695, %v5312_v2 }
 0xab3   :  { %v5297_v55 = vpop.xlane.xlu0 %5296 }
 0xab4   :  { %7457 = vpow2.f32 %v5322_v8  ;;  %v5313_v6 = vsub.f32 %v4966_v54, %v5297_v55  ;;  %v8427_v11 = vpop.eup %7453 }
 0xab5   :  { %v8429_v58 = vpop.eup %7455  ;;  %v5334_v13 = vsel %vm2757_vm3, %v8427_v11, 0.0 }
 0xab6   :  { %v5324_v60 = vmul.f32 1.442695, %v5313_v6  ;;  %v5337_v14 = vsel %vm2757_vm3, %v8429_v58, 0.0  ;;  %5335 = vadd.xlane.f32.xlu1 %v5334_v13 }
 0xab7   :  { %5338 = vadd.xlane.f32.xlu0 %v5337_v14 }
 0xab8   :  { %7459 = vpow2.f32 %v5324_v60  ;;  %v5300_v16 = vpop.xlane.xlu1 %5299 }
 0xab9   :  { %v5314_v17 = vsub.f32 %v5045_v61, %v5300_v16 }
 0xaba   :  { %v5303_v19 = vpop.xlane.xlu0 %5302 }
 0xabb   :  { %v5326_v21 = vmul.f32 1.442695, %v5314_v17  ;;  %v5315_v22 = vsub.f32 %v5124_v44, %v5303_v19 }
 0xabd   :  { %7461 = vpow2.f32 %v5326_v21  ;;  %v5328_v23 = vmul.f32 1.442695, %v5315_v22 }
 0xabe   :  { %v8435_v15 = vpop.eup %7457 }
 0xabf   :  { %7463 = vpow2.f32 %v5328_v23  ;;  %v5340_v24 = vsel %vm2757_vm3, %v8435_v15, 0.0 }
 0xac0   :  { %5341 = vadd.xlane.f32.xlu0 %v5340_v24  ;;  %v5306_v12 = vpop.xlane.xlu1 %5305 }
 0xac1   :  { %v5316_v28 = vsub.f32 %v5203_v3, %v5306_v12 }
 0xac2   :  { %v8439_v30 = vpop.eup %7459  ;;  %v8441_v31 = vpop.xlane.xlu0 %5308 }
 0xac3   :  { %v5330_v32 = vmul.f32 1.442695, %v5316_v28  ;;  %v5343_v35 = vsel %vm2757_vm3, %v8439_v30, 0.0 }
 0xac4   :  { %5344 = vadd.xlane.f32.xlu1 %v5343_v35  ;;  %v4075_v43 = vpop.permute.xlu1 %4074 }
 0xac5   :  { %7465 = vpow2.f32 %v5330_v32 }
 0xac6   :  { %v4077_v45 = vpop.permute.xlu0 %4076 }
 0xac7   :  { %v8445_v10 = vpop.eup %7461 }
 0xac8   :  { %v4087_v49 = vpop.permute.xlu1 %4086  ;;  %v5346_v51 = vsel %vm2757_vm3, %v8445_v10, 0.0 }
 0xac9   :  { %v8449_v52 = vpop.eup %7463  ;;  %v4110_v53 = vcombine.low %v8394_v5, %v4087_v49  ;;  %v4111_v50 = vcombine.high %v8394_v5, %v4087_v49  ;;  %5347 = vadd.xlane.f32.xlu0 %v5346_v51 }
 0xaca   :  { %v4099_v54 = vpop.permute.xlu0 %4098  ;;  %v5349_v62 = vsel %vm2757_vm3, %v8449_v52, 0.0 }
 0xacb   :  { %v4118_v41 = vrot.slane %v4110_v53, %v7726_v38  ;;  %v4125_v42 = vrot.slane %v4111_v50, %v7726_v38  ;;  %v4126_v47 = vcombine.low %v4075_v43, %v4099_v54  ;;  %v4127_v0 = vcombine.high %v4075_v43, %v4099_v54 }
 0xacc   :  { %v4089_v61 = vpop.permute.xlu1 %4088 }
 0xacd   :  { %v4134_v59 = vrot.slane %v4126_v47, %v7726_v38  ;;  %v4141_v44 = vrot.slane %v4127_v0, %v7726_v38  ;;  %5350 = vadd.xlane.f32.xlu0 %v5349_v62  ;;  %v4178_v27 = vcombine.low %v8401_v7, %v4089_v61  ;;  %v4179_v57 = vcombine.high %v8401_v7, %v4089_v61 }
 0xacf   :  { %v8459_v46 = vpop.eup %7465  ;;  %v4142_v56 = vcombine.low %v4118_v41, %v4134_v59  ;;  %v4143_v3 = vcombine.high %v4118_v41, %v4134_v59  ;;  %v4158_v25 = vcombine.low %v4125_v42, %v4141_v44  ;;  %v4159_v4 = vcombine.high %v4125_v42, %v4141_v44 }
 0xad0   :  { %v4101_v26 = vpop.permute.xlu1 %4100  ;;  %v5352_v5 = vsel %vm2757_vm3, %v8459_v46, 0.0  ;;  %v4186_v7 = vrot.slane %v4178_v27, %v7726_v38  ;;  %v4193_v6 = vrot.slane %v4179_v57, %v7726_v38 }
 0xad1   :  { %v4150_v36 = vrot.slane %v4142_v56, %v7732_v48  ;;  %v4157_v39 = vrot.slane %v4143_v3, %v7732_v48  ;;  %v4166_v63 = vrot.slane %v4158_v25, %v7732_v48  ;;  %v4173_v40 = vrot.slane %v4159_v4, %v7732_v48  ;;  %5353 = vadd.xlane.f32.xlu0 %v5352_v5 }
 0xad2   :  { %v4194_v1 = vcombine.low %v4077_v45, %v4101_v26  ;;  %v4195_v9 = vcombine.high %v4077_v45, %v4101_v26  ;;  %v5317_v4 = vsub.f32 %v8389_v34, %v8441_v31 }
 0xad3   :  { %v4382_v20 = vcombine.low %v4150_v36, %v4157_v39  ;;  %v6722_v2 = vcombine.high %v4150_v36, %v4157_v39  ;;  %v4398_v8 = vcombine.low %v4166_v63, %v4173_v40  ;;  %v6723_v55 = vcombine.high %v4166_v63, %v4173_v40 }
 0xad4   :  { %v4202_v60 = vrot.slane %v4194_v1, %v7726_v38  ;;  %v4209_v13 = vrot.slane %v4195_v9, %v7726_v38 }
 0xad5   :  { %4104 = vrot.lane.b32.xlu1 %v8412_v37, %s7577_s25  ;;  %v4389_v21 = vrot.slane %v4382_v20, %v7726_v38  ;;  %v4397_v22 = vrot.slane %v6722_v2, %v7726_v38  ;;  %v4405_v23 = vrot.slane %v4398_v8, %v7726_v38  ;;  %v4413_v24 = vrot.slane %v6723_v55, %v7726_v38 }
 0xad6   :  { %v4210_v14 = vcombine.low %v4186_v7, %v4202_v60  ;;  %v4211_v16 = vcombine.high %v4186_v7, %v4202_v60  ;;  %v4226_v17 = vcombine.low %v4193_v6, %v4209_v13  ;;  %v4227_v19 = vcombine.high %v4193_v6, %v4209_v13 }
 0xad7   :  { %v4414_v53 = vcombine.low %v4389_v21, %v4397_v22  ;;  %v4430_v50 = vcombine.low %v4405_v23, %v4413_v24  ;;  %v4415_v3 = vcombine.high %v4389_v21, %v4397_v22  ;;  %v4431_v25 = vcombine.high %v4405_v23, %v4413_v24 }
 0xad8   :  { %v4218_v12 = vrot.slane %v4210_v14, %v7732_v48  ;;  %v4225_v28 = vrot.slane %v4211_v16, %v7732_v48  ;;  %v4234_v32 = vrot.slane %v4226_v17, %v7732_v48  ;;  %v4241_v35 = vrot.slane %v4227_v19, %v7732_v48  ;;  %v4079_v16 = vpop.permute.xlu1 %4078  ;;  %v4081_v19 = vpop.permute.xlu0 %4080 }
 0xad9   :  { %v4422_v61 = vrot.slane %v4414_v53, %v7732_v48  ;;  %v4438_v62 = vrot.slane %v4430_v50, %v7732_v48  ;;  %v4429_v36 = vrot.slane %v4415_v3, %v7732_v48  ;;  %v4445_v39 = vrot.slane %v4431_v25, %v7732_v48 }
 0xada   :  { %v4450_v43 = vcombine.low %v4218_v12, %v4225_v28  ;;  %v6724_v45 = vcombine.high %v4218_v12, %v4225_v28  ;;  %v4466_v49 = vcombine.low %v4234_v32, %v4241_v35  ;;  %v6725_v51 = vcombine.high %v4234_v32, %v4241_v35 }
 0xadb   :  { %v4446_v27 = vcombine.low %v4422_v61, %v4438_v62  ;;  %v4447_v57 = vcombine.high %v4422_v61, %v4438_v62  ;;  %v4448_v20 = vcombine.low %v4429_v36, %v4445_v39  ;;  %v4449_v2 = vcombine.high %v4429_v36, %v4445_v39 }
 0xadc   :  { %v4457_v54 = vrot.slane %v4450_v43, %v7726_v38  ;;  %v4465_v41 = vrot.slane %v6724_v45, %v7726_v38  ;;  %v4473_v42 = vrot.slane %v4466_v49, %v7726_v38  ;;  %v4481_v47 = vrot.slane %v6725_v51, %v7726_v38  ;;  %v4091_v17 = vpop.permute.xlu1 %4090  ;;  %v4103_v22 = vpop.permute.xlu0 %4102 }
 0xadd   :  { %v5332_v8 = vmul.f32 1.442695, %v5317_v4  ;;  %v4246_v23 = vcombine.low %v8415_v33, %v4091_v17  ;;  %v4247_v12 = vcombine.high %v8415_v33, %v4091_v17  ;;  %v4262_v32 = vcombine.low %v4079_v16, %v4103_v22 }
 0xade   :  { %v4482_v0 = vcombine.low %v4457_v54, %v4465_v41  ;;  %v4498_v44 = vcombine.low %v4473_v42, %v4481_v47  ;;  %v4483_v63 = vcombine.high %v4457_v54, %v4465_v41  ;;  %v4499_v40 = vcombine.high %v4473_v42, %v4481_v47 }
 0xadf   :  { %7467 = vpow2.f32 %v5332_v8  ;;  %v4263_v35 = vcombine.high %v4079_v16, %v4103_v22  ;;  %v4254_v43 = vrot.slane %v4246_v23, %v7726_v38  ;;  %v4261_v45 = vrot.slane %v4247_v12, %v7726_v38 }
 0xae0   :  { %v4490_v59 = vrot.slane %v4482_v0, %v7732_v48  ;;  %v4506_v56 = vrot.slane %v4498_v44, %v7732_v48  ;;  %v4497_v55 = vrot.slane %v4483_v63, %v7732_v48  ;;  %v4513_v7 = vrot.slane %v4499_v40, %v7732_v48  ;;  %v4093_v21 = vpop.permute.xlu1 %4092 }
 0xae1   :  { %v4270_v49 = vrot.slane %v4262_v32, %v7726_v38  ;;  %v4277_v51 = vrot.slane %v4263_v35, %v7726_v38  ;;  %v4314_v25 = vcombine.low %v8412_v37, %v4093_v21 }
 0xae2   :  { %v4514_v26 = vcombine.low %v4490_v59, %v4506_v56  ;;  %v4515_v5 = vcombine.high %v4490_v59, %v4506_v56  ;;  %v4516_v34 = vcombine.low %v4497_v55, %v4513_v7  ;;  %v4517_v31 = vcombine.high %v4497_v55, %v4513_v7 }
 0xae3   :  { %v4278_v53 = vcombine.low %v4254_v43, %v4270_v49  ;;  %v4279_v50 = vcombine.high %v4254_v43, %v4270_v49  ;;  %v4294_v54 = vcombine.low %v4261_v45, %v4277_v51  ;;  %v4295_v41 = vcombine.high %v4261_v45, %v4277_v51 }
 0xae4   :  { %v7329_v1 = vpack.c.bf16 %v4514_v26, %v4446_v27  ;;  %v7332_v9 = vpack.c.bf16 %v4515_v5, %v4447_v57  ;;  %v7335_v6 = vpack.c.bf16 %v4516_v34, %v4448_v20  ;;  %v7338_v60 = vpack.c.bf16 %v4517_v31, %v4449_v2 }
 0xae5   :  { %v4286_v0 = vrot.slane %v4278_v53, %v7732_v48  ;;  %v4293_v61 = vrot.slane %v4279_v50, %v7732_v48  ;;  %v4302_v59 = vrot.slane %v4294_v54, %v7732_v48  ;;  %v4309_v44 = vrot.slane %v4295_v41, %v7732_v48 }
 0xae6   :  { %7330 = vmatpush3.bf16.msra.mxu0 %v7329_v1  ;;  %7333 = vmatpush3.bf16.msra.mxu1 %v7332_v9  ;;  %v4315_v27 = vcombine.high %v8412_v37, %v4093_v21  ;;  %v4322_v37 = vrot.slane %v4314_v25, %v7726_v38 }
 0xae7   :  { %7334 = vmatprep.subr.bf16.mxu0 %v7586_v18  ;;  %7337 = vmatprep.subr.bf16.mxu1 %v7586_v18  ;;  %v4518_v4 = vcombine.low %v4286_v0, %v4293_v61  ;;  %v4534_v57 = vcombine.low %v4302_v59, %v4309_v44  ;;  %v6727_v26 = vcombine.high %v4302_v59, %v4309_v44 }
 0xae8   :  { %v4329_v1 = vrot.slane %v4315_v27, %v7726_v38 }
 0xae9   :  { %v8499_v13 = vpop.eup %7467  ;;  %v4525_v40 = vrot.slane %v4518_v4, %v7726_v38  ;;  %v4541_v8 = vrot.slane %v4534_v57, %v7726_v38  ;;  %v4549_v55 = vrot.slane %v6727_v26, %v7726_v38 }
 0xaea   :  { %v5355_v14 = vsel %vm2757_vm3, %v8499_v13, 0.0 }
 0xaeb   :  { %v4567_v41 = vcombine.high %v4541_v8, %v4549_v55 }
 0xaed   :  { %v4581_v57 = vrot.slane %v4567_v41, %v7732_v48 }
 0xaf9   :  { %5356 = vadd.xlane.f32.xlu1 %v5355_v14 }
 0xb43   :  { %v5336_v24 = vpop.xlane.xlu1 %5335 }
 0xb44   :  { %7469 = vrcp.f32 %v5336_v24  ;;  %v5339_v28 = vpop.xlane.xlu0 %5338  ;;  %v4566_v24 = vcombine.low %v4541_v8, %v4549_v55 }
 0xb45   :  { %7471 = vrcp.f32 %v5339_v28 }
 0xb46   :  { %v4574_v50 = vrot.slane %v4566_v24, %v7732_v48 }
 0xb4d   :  { %v5342_v42 = vpop.xlane.xlu0 %5341 }
 0xb4e   :  { %7473 = vrcp.f32 %v5342_v42  ;;  %v7470_v33 = vpop.eup %7469 }
 0xb4f   :  { %v7472_v47 = vpop.eup %7471  ;;  %v5359_v62 = vmul.f32 %v7470_v33, %v8427_v11  ;;  %v6726_v11 = vcombine.high %v4286_v0, %v4293_v61 }
 0xb50   :  { %v5361_v56 = vmul.f32 %v7472_v47, %v8429_v58 }
 0xb51   :  { %v5345_v3 = vpop.xlane.xlu1 %5344  ;;  %7140 = vmatmul.mubr.msk.f32.vlgmr.msra.gmra.mrb[28].mxu0 %vm2757_vm3, %v5359_v62  ;;  %v4533_v2 = vrot.slane %v6726_v11, %v7726_v38 }
 0xb52   :  { %7475 = vrcp.f32 %v5345_v3  ;;  %7147 = vmatmul.mubr.msk.f32.vlgmr.msra.gmra.mrb[36].mxu1 %vm2757_vm3, %v5361_v56  ;;  %7336 = vmatpush3.bf16.msra.mxu0 %v7335_v6 }
 0xb53   :  { %7339 = vmatpush3.bf16.msra.mxu1 %v7338_v60  ;;  %7153 = vmatprep.mubr.msk.f32.mxu0 %vm7582_vm1, %v7581_v29  ;;  %v4550_v23 = vcombine.low %v4525_v40, %v4533_v2  ;;  %v4551_v54 = vcombine.high %v4525_v40, %v4533_v2 }
 0xb54   :  { %7160 = vmatprep.mubr.msk.f32.mxu1 %vm7582_vm1, %v7581_v29  ;;  %7340 = vmatprep.subr.bf16.mxu0 %v7586_v18 }
 0xb55   :  { %v4105_v58 = vpop.permute.xlu1 %4104  ;;  %7343 = vmatprep.subr.bf16.mxu1 %v7586_v18  ;;  %v4565_v11 = vrot.slane %v4551_v54, %v7732_v48 }
 0xb56   :  { %v4330_v5 = vcombine.low %v4081_v19, %v4105_v58  ;;  %v4331_v36 = vcombine.high %v4081_v19, %v4105_v58  ;;  %v5348_v39 = vpop.xlane.xlu0 %5347 }
 0xb57   :  { %7477 = vrcp.f32 %v5348_v39 }
 0xb58   :  { %v7474_v63 = vpop.eup %7473  ;;  %v4338_v9 = vrot.slane %v4330_v5, %v7726_v38  ;;  %v4345_v20 = vrot.slane %v4331_v36, %v7726_v38 }
 0xb59   :  { %v5363_v7 = vmul.f32 %v7474_v63, %v8435_v15  ;;  %v4585_v63 = vcombine.high %v4565_v11, %v4581_v57 }
 0xb5a   :  { %v4346_v34 = vcombine.low %v4322_v37, %v4338_v9  ;;  %v4347_v31 = vcombine.high %v4322_v37, %v4338_v9  ;;  %v4362_v6 = vcombine.low %v4329_v1, %v4345_v20  ;;  %v4363_v60 = vcombine.high %v4329_v1, %v4345_v20  ;;  %v5351_v14 = vpop.xlane.xlu0 %5350 }
 0xb5b   :  { %7154 = vmatmul.mubr.msk.f32.vlgmr.msra.gmra.mrb[30].mxu0 %vm2757_vm3, %v5363_v7  ;;  %7479 = vrcp.f32 %v5351_v14  ;;  %v4584_v37 = vcombine.low %v4565_v11, %v4581_v57 }
 0xb5c   :  { %v7476_v16 = vpop.eup %7475  ;;  %v4354_v17 = vrot.slane %v4346_v34, %v7732_v48  ;;  %v4361_v19 = vrot.slane %v4347_v31, %v7732_v48  ;;  %v4370_v21 = vrot.slane %v4362_v6, %v7732_v48  ;;  %v4377_v22 = vrot.slane %v4363_v60, %v7732_v48  ;;  %7167 = vmatprep.mubr.msk.f32.mxu0 %vm7582_vm1, %v7581_v29 }
 0xb5d   :  { %v5365_v15 = vmul.f32 %v7476_v16, %v8439_v30  ;;  %v4558_v30 = vrot.slane %v4550_v23, %v7732_v48 }
 0xb5e   :  { %v4586_v12 = vcombine.low %v4354_v17, %v4361_v19  ;;  %v6728_v28 = vcombine.high %v4354_v17, %v4361_v19  ;;  %v4602_v32 = vcombine.low %v4370_v21, %v4377_v22  ;;  %v6729_v35 = vcombine.high %v4370_v21, %v4377_v22  ;;  %v5354_v43 = vpop.xlane.xlu0 %5353 }
 0xb5f   :  { %7161 = vmatmul.mubr.msk.f32.vlgmr.msra.gmra.mrb[38].mxu1 %vm2757_vm3, %v5365_v15  ;;  %7481 = vrcp.f32 %v5354_v43  ;;  %v4582_v56 = vcombine.low %v4558_v30, %v4574_v50  ;;  %v4583_v3 = vcombine.high %v4558_v30, %v4574_v50 }
 0xb60   :  { %v4593_v45 = vrot.slane %v4586_v12, %v7726_v38  ;;  %v4601_v49 = vrot.slane %v6728_v28, %v7726_v38  ;;  %v4609_v51 = vrot.slane %v4602_v32, %v7726_v38  ;;  %v4617_v53 = vrot.slane %v6729_v35, %v7726_v38  ;;  %7174 = vmatprep.mubr.msk.f32.mxu1 %vm7582_vm1, %v7581_v29 }
 0xb61   :  { %v7478_v44 = vpop.eup %7477 }
 0xb62   :  { %v4618_v42 = vcombine.low %v4593_v45, %v4601_v49  ;;  %v4634_v33 = vcombine.low %v4609_v51, %v4617_v53  ;;  %v4619_v47 = vcombine.high %v4593_v45, %v4601_v49  ;;  %v4635_v0 = vcombine.high %v4609_v51, %v4617_v53 }
 0xb63   :  { %v5367_v40 = vmul.f32 %v7478_v44, %v8445_v10 }
 0xb64   :  { %v4626_v61 = vrot.slane %v4618_v42, %v7732_v48  ;;  %v4642_v62 = vrot.slane %v4634_v33, %v7732_v48  ;;  %v4633_v59 = vrot.slane %v4619_v47, %v7732_v48  ;;  %v4649_v25 = vrot.slane %v4635_v0, %v7732_v48 }
 0xb65   :  { %v7480_v26 = vpop.eup %7479 }
 0xb66   :  { %v4650_v4 = vcombine.low %v4626_v61, %v4642_v62  ;;  %v4651_v27 = vcombine.high %v4626_v61, %v4642_v62  ;;  %v4652_v36 = vcombine.low %v4633_v59, %v4649_v25  ;;  %v4653_v39 = vcombine.high %v4633_v59, %v4649_v25 }
 0xb67   :  { %v5369_v1 = vmul.f32 %v7480_v26, %v8449_v52 }
 0xb68   :  { %v7341_v58 = vpack.c.bf16 %v4650_v4, %v4582_v56  ;;  %v7344_v5 = vpack.c.bf16 %v4651_v27, %v4583_v3  ;;  %v7347_v20 = vpack.c.bf16 %v4652_v36, %v4584_v37  ;;  %v7350_v2 = vpack.c.bf16 %v4653_v39, %v4585_v63 }
 0xb69   :  { %v7482_v9 = vpop.eup %7481 }
 0xb6a   :  { %7342 = vmatpush3.bf16.msra.mxu0 %v7341_v58  ;;  %7345 = vmatpush3.bf16.msra.mxu1 %v7344_v5  ;;  %v5371_v8 = vmul.f32 %v7482_v9, %v8459_v46 }
 0xb6b   :  { %7346 = vmatprep.subr.bf16.mxu0 %v7586_v18  ;;  %7349 = vmatprep.subr.bf16.mxu1 %v7586_v18 }
 0xb6d   :  { %7168 = vmatmul.mubr.msk.f32.vlgmr.msra.gmra.mrb[32].mxu0 %vm2757_vm3, %v5367_v40  ;;  %7175 = vmatmul.mubr.msk.f32.vlgmr.msra.gmra.mrb[40].mxu1 %vm2757_vm3, %v5369_v1 }
 0xb6e   :  { %7348 = vmatpush3.bf16.msra.mxu0 %v7347_v20  ;;  %7351 = vmatpush3.bf16.msra.mxu1 %v7350_v2 }
 0xb6f   :  { %7181 = vmatprep.mubr.msk.f32.mxu0 %vm7582_vm1, %v7581_v29  ;;  %7188 = vmatprep.mubr.msk.f32.mxu1 %vm7582_vm1, %v7581_v29 }
 0xb71   :  { %7182 = vmatmul.mubr.msk.f32.vlgmr.msra.gmra.mrb[34].mxu0 %vm2757_vm3, %v5371_v8 }
 0xb86   :  { %v5357_v18 = vpop.xlane.xlu1 %5356 }
 0xb87   :  { %7483 = vrcp.f32 %v5357_v18 }
 0xb91   :  { %v7484_v10 = vpop.eup %7483 }
 0xb92   :  { %v5373_v52 = vmul.f32 %v7484_v10, %v8499_v13 }
 0xb94   :  { %7189 = vmatmul.mubr.msk.f32.vlgmr.msra.gmra.mrb[42].mxu1 %vm2757_vm3, %v5373_v52 }
 0xc24   :  { %v5443_v55 = vpop.f32.mrb[28].mxu0 }
 0xc25   :  { %v5516_v7 = vpop.f32.mrb[36].mxu1  ;;  %v7141_v34 = vpop.f32.mrb[29].mxu0 }
 0xc26   :  { %v7148_v31 = vpop.f32.mrb[37].mxu1  ;;  %v99_v34 = vld [vmem:[#allocation2 + $0xa0] sm:$0xff] }
 0xc27   :  { %v100_v31 = vld [vmem:[#allocation2 + $0xa8] sm:$0xff] }
 0xc2e   :  { %v5589_v46 = vpop.f32.mrb[30].mxu0 }
 0xc2f   :  { %v5958_v6 = vcombine.low %v5443_v55, %v5589_v46  ;;  %v5959_v60 = vcombine.high %v5443_v55, %v5589_v46  ;;  %v7155_v14 = vpop.f32.mrb[31].mxu0 }
 0xc31   :  { %v5966_v21 = vrot.slane %v5958_v6, %v7726_v38  ;;  %v5973_v22 = vrot.slane %v5959_v60, %v7726_v38 }
 0xc32   :  { %v5662_v16 = vpop.f32.mrb[38].mxu1 }
 0xc33   :  { %v5974_v17 = vcombine.low %v5516_v7, %v5662_v16  ;;  %v5975_v29 = vcombine.high %v5516_v7, %v5662_v16  ;;  %v7162_v19 = vpop.f32.mrb[39].mxu1  ;;  %v7352_v16 = vpack.c.bf16 %v100_v31, %v99_v34  ;;  %v6392_v34 = vld [vmem:[%s8734_s8 + $0x8] sm:$0xff]  ;;  %v6393_v31 = vld [vmem:[%s8734_s8 + $0x10] sm:$0xff] }
 0xc35   :  { %v5982_v13 = vrot.slane %v5974_v17, %v7726_v38  ;;  %v5989_v15 = vrot.slane %v5975_v29, %v7726_v38  ;;  %7353 = vmatprep.subr.bf16.mxu0 %v7352_v16 }
 0xc36   :  { %7355 = vmatpush3.bf16.msra.mxu0 %v7352_v16  ;;  %v6486_v16 = vld [vmem:[%s8736_s10 + $0x8] sm:$0xff] }
 0xc37   :  { %v5990_v23 = vcombine.low %v5966_v21, %v5982_v13  ;;  %v5991_v24 = vcombine.high %v5966_v21, %v5982_v13  ;;  %v6006_v12 = vcombine.low %v5973_v22, %v5989_v15  ;;  %v6007_v28 = vcombine.high %v5973_v22, %v5989_v15  ;;  %v101_v22 = vld [vmem:[#allocation2 + $0xb0] sm:$0xff]  ;;  %v102_v13 = vld [vmem:[#allocation2 + $0xb8] sm:$0xff] }
 0xc39   :  { %v5998_v32 = vrot.slane %v5990_v23, %v7732_v48  ;;  %v6005_v35 = vrot.slane %v5991_v24, %v7732_v48  ;;  %v6014_v43 = vrot.slane %v6006_v12, %v7732_v48  ;;  %v6021_v45 = vrot.slane %v6007_v28, %v7732_v48 }
 0xc3a   :  { %v7356_v28 = vpack.c.bf16 %v102_v13, %v101_v22  ;;  %v6489_v22 = vld [vmem:[%s8736_s10 + $0x20] sm:$0xff]  ;;  %v6490_v13 = vld [vmem:[%s8736_s10 + $0x28] sm:$0xff] }
 0xc3b   :  { %v6094_v49 = vcombine.low %v5998_v32, %v6005_v35  ;;  %v6762_v51 = vcombine.high %v5998_v32, %v6005_v35  ;;  %v6110_v53 = vcombine.low %v6014_v43, %v6021_v45  ;;  %v6763_v30 = vcombine.high %v6014_v43, %v6021_v45 }
 0xc3c   :  { %7357 = vmatprep.subr.bf16.mxu0 %v7356_v28 }
 0xc3d   :  { %v6101_v50 = vrot.slane %v6094_v49, %v7726_v38  ;;  %v6109_v54 = vrot.slane %v6762_v51, %v7726_v38  ;;  %v6117_v41 = vrot.slane %v6110_v53, %v7726_v38  ;;  %v6125_v42 = vrot.slane %v6763_v30, %v7726_v38  ;;  %7359 = vmatpush3.bf16.msra.mxu0 %v7356_v28  ;;  %v6493_v28 = vld [vmem:[%s8736_s10 + $0x40] sm:$0xff] }
 0xc3f   :  { %v6126_v33 = vcombine.low %v6101_v50, %v6109_v54  ;;  %v6142_v47 = vcombine.low %v6117_v41, %v6125_v42  ;;  %v6127_v0 = vcombine.high %v6101_v50, %v6109_v54  ;;  %v6143_v61 = vcombine.high %v6117_v41, %v6125_v42 }
 0xc40   :  { %v5735_v62 = vpop.f32.mrb[32].mxu0  ;;  %v5808_v59 = vpop.f32.mrb[40].mxu1 }
 0xc41   :  { %v7169_v44 = vpop.f32.mrb[33].mxu0  ;;  %v7176_v56 = vpop.f32.mrb[41].mxu1  ;;  %v8584_v3 = vrot.slane %v6126_v33, %v7732_v48  ;;  %v8587_v25 = vrot.slane %v6142_v47, %v7732_v48  ;;  %v6141_v4 = vrot.slane %v6127_v0, %v7732_v48  ;;  %v6157_v27 = vrot.slane %v6143_v61, %v7732_v48 }
 0xc43   :  { %v6159_v11 = vcombine.high %v8584_v3, %v8587_v25  ;;  %v6158_v57 = vcombine.low %v8584_v3, %v8587_v25  ;;  %v6160_v26 = vcombine.low %v6141_v4, %v6157_v27  ;;  %v6161_v58 = vcombine.high %v6141_v4, %v6157_v27  ;;  %v6766_v4 = vld [vmem:[#allocation5 + $0x5] ss:$0 sm:$0xff] }
 0xc44   :  { %v5881_v5 = vpop.f32.mrb[34].mxu0 }
 0xc45   :  { %v6026_v36 = vcombine.low %v5735_v62, %v5881_v5  ;;  %v6027_v39 = vcombine.high %v5735_v62, %v5881_v5  ;;  %6232 = vrot.lane.b32.xlu0 %v6159_v11, %s7573_s28  ;;  %v7183_v37 = vpop.f32.mrb[35].mxu0 }
 0xc47   :  { %v6034_v20 = vrot.slane %v6026_v36, %v7726_v38  ;;  %v6041_v2 = vrot.slane %v6027_v39, %v7726_v38  ;;  %v7498_v36 = vld [vmem:[%s8726_s0] sm:$0xff] }
 0xc49   :  { %6240 = vrot.lane.b32.xlu0 %v6160_v26, %s7575_s18 }
 0xc4d   :  { %6248 = vrot.lane.b32.xlu0 %v6161_v58, %s7585_s30  ;;  %v7497_v58 = vld [vmem:[%s8726_s0 + $0x8] sm:$0xff] }
 0xc67   :  { %v5954_v63 = vpop.f32.mrb[42].mxu1 }
 0xc68   :  { %v6042_v40 = vcombine.low %v5808_v59, %v5954_v63  ;;  %v6043_v1 = vcombine.high %v5808_v59, %v5954_v63  ;;  %v7190_v9 = vpop.f32.mrb[43].mxu1 }
 0xc6a   :  { %v6050_v8 = vrot.slane %v6042_v40, %v7726_v38  ;;  %v6057_v18 = vrot.slane %v6043_v1, %v7726_v38 }
 0xc6c   :  { %v6058_v10 = vcombine.low %v6034_v20, %v6050_v8  ;;  %v6059_v52 = vcombine.high %v6034_v20, %v6050_v8  ;;  %v6074_v55 = vcombine.low %v6041_v2, %v6057_v18  ;;  %v6075_v7 = vcombine.high %v6041_v2, %v6057_v18 }
 0xc6e   :  { %v6066_v46 = vrot.slane %v6058_v10, %v7732_v48  ;;  %v6073_v6 = vrot.slane %v6059_v52, %v7732_v48  ;;  %v6082_v60 = vrot.slane %v6074_v55, %v7732_v48  ;;  %v6089_v14 = vrot.slane %v6075_v7, %v7732_v48  ;;  %v6391_v7 = vld [vmem:[%s8734_s8] sm:$0xff] }
 0xc70   :  { %v6162_v17 = vcombine.low %v6066_v46, %v6073_v6  ;;  %v6764_v29 = vcombine.high %v6066_v46, %v6073_v6  ;;  %v6178_v19 = vcombine.low %v6082_v60, %v6089_v14  ;;  %v6765_v21 = vcombine.high %v6082_v60, %v6089_v14  ;;  %v6394_v6 = vld [vmem:[%s8734_s8 + $0x18] sm:$0xff]  ;;  %v6485_v14 = vld [vmem:[%s8736_s10] sm:$0xff] }
 0xc71   :  { %v7360_v46 = vpack.c.bf16 %v6392_v34, %v6391_v7  ;;  %v7364_v60 = vpack.c.bf16 %v6394_v6, %v6393_v31 }
 0xc72   :  { %v6169_v15 = vrot.slane %v6162_v17, %v7726_v38  ;;  %v6177_v23 = vrot.slane %v6764_v29, %v7726_v38  ;;  %v6185_v24 = vrot.slane %v6178_v19, %v7726_v38  ;;  %v6193_v12 = vrot.slane %v6765_v21, %v7726_v38  ;;  %v6487_v17 = vld [vmem:[%s8736_s10 + $0x10] sm:$0xff]  ;;  %v6488_v19 = vld [vmem:[%s8736_s10 + $0x18] sm:$0xff] }
 0xc73   :  { %7361 = vmatprep.subr.bf16.mxu1 %v7360_v46  ;;  %v7368_v29 = vpack.c.bf16 %v6486_v16, %v6485_v14  ;;  %v7372_v21 = vpack.c.bf16 %v6488_v19, %v6487_v17 }
 0xc74   :  { %v6194_v32 = vcombine.low %v6169_v15, %v6177_v23  ;;  %v6210_v35 = vcombine.low %v6185_v24, %v6193_v12  ;;  %v6195_v43 = vcombine.high %v6169_v15, %v6177_v23  ;;  %v6211_v45 = vcombine.high %v6185_v24, %v6193_v12  ;;  %7363 = vmatpush3.bf16.msra.mxu1 %v7360_v46  ;;  %v6491_v23 = vld [vmem:[%s8736_s10 + $0x30] sm:$0xff]  ;;  %v6492_v24 = vld [vmem:[%s8736_s10 + $0x38] sm:$0xff] }
 0xc75   :  { %7365 = vmatprep.subr.bf16.mxu1 %v7364_v60  ;;  %7369 = vmatprep.subr.bf16.mxu0 %v7368_v29  ;;  %v7376_v15 = vpack.c.bf16 %v6490_v13, %v6489_v22  ;;  %v7380_v12 = vpack.c.bf16 %v6492_v24, %v6491_v23  ;;  %v6775_v23 = vld [vmem:[#allocation5 + $0xa] ss:$0 sm:$0xff] }
 0xc76   :  { %v6202_v49 = vrot.slane %v6194_v32, %v7732_v48  ;;  %v6218_v51 = vrot.slane %v6210_v35, %v7732_v48  ;;  %v6209_v53 = vrot.slane %v6195_v43, %v7732_v48  ;;  %v6225_v30 = vrot.slane %v6211_v45, %v7732_v48  ;;  %v6494_v32 = vld [vmem:[%s8736_s10 + $0x48] sm:$0xff]  ;;  %v6495_v43 = vld [vmem:[%s8736_s10 + $0x50] sm:$0xff]  ;;  %v6496_v45 = vld [vmem:[%s8736_s10 + $0x58] sm:$0xff] }
 0xc77   :  { %v7384_v35 = vpack.c.bf16 %v6494_v32, %v6493_v28  ;;  %v6776_v32 = vld [vmem:[#allocation5 + $0xb] ss:$0 sm:$0xff] }
 0xc78   :  { %v6227_v50 = vcombine.high %v6202_v49, %v6218_v51  ;;  %v6226_v54 = vcombine.low %v6202_v49, %v6218_v51  ;;  %v6228_v41 = vcombine.low %v6209_v53, %v6225_v30  ;;  %v6229_v38 = vcombine.high %v6209_v53, %v6225_v30  ;;  %7367 = vmatpush3.bf16.msra.mxu1 %v7364_v60  ;;  %v6497_v51 = vld [vmem:[%s8736_s10 + $0x60] sm:$0xff]  ;;  %v6498_v53 = vld [vmem:[%s8736_s10 + $0x68] sm:$0xff] }
 0xc79   :  { %v7388_v49 = vpack.c.bf16 %v6496_v45, %v6495_v43  ;;  %v7392_v30 = vpack.c.bf16 %v6498_v53, %v6497_v51 }
 0xc7a   :  { %6234 = vrot.lane.b32.xlu1 %v6227_v50, %s7573_s28 }
 0xc7e   :  { %6242 = vrot.lane.b32.xlu1 %v6228_v41, %s7575_s18 }
 0xc82   :  { %6250 = vrot.lane.b32.xlu1 %v6229_v38, %s7585_s30 }
 0xcb7   :  { %v6233_v42 = vpop.permute.xlu0 %6232 }
 0xcb8   :  { %v6254_v47 = vsel %vm1178_vm2, %v6158_v57, %v6233_v42 }
 0xcbb   :  { %v6241_v33 = vpop.permute.xlu0 %6240 }
 0xcbc   :  { %v6256_v0 = vsel %vm2757_vm3, %v6254_v47, %v6241_v33 }
 0xcbf   :  { %v6249_v61 = vpop.permute.xlu0 %6248 }
 0xcc0   :  { %v6258_v48 = vsel %vm2760_vm4, %v6256_v0, %v6249_v61  ;;  %v6769_v0 = vld [vmem:[#allocation5 + $0x8] ss:$0 sm:$0xff] }
 0xcc1   :  { %7199 = vmatprep.mubr.msk.f32.mxu0 %vm129_vm0, %v6258_v48  ;;  %v6770_v48 = vld [vmem:[#allocation5 + $0x9] ss:$0 sm:$0xff] }
 0xcec   :  { %v6235_v62 = vpop.permute.xlu1 %6234 }
 0xced   :  { %v6255_v44 = vsel %vm1178_vm2, %v6226_v54, %v6235_v62 }
 0xcf0   :  { %v6243_v59 = vpop.permute.xlu1 %6242 }
 0xcf1   :  { %v6257_v56 = vsel %vm2757_vm3, %v6255_v44, %v6243_v59 }
 0xcf4   :  { %v6251_v3 = vpop.permute.xlu1 %6250 }
 0xcf5   :  { %v6259_v25 = vsel %vm2760_vm4, %v6257_v56, %v6251_v3 }
 0xcf6   :  { %7200 = vmatmul.mubr.msk.f32.vlgmr.msra.gmra.mrb[36].mxu0 %vm129_vm0, %v6259_v25 }
 0xcf7   :  { %7371 = vmatpush3.bf16.msra.mxu0 %v7368_v29 }
 0xcf8   :  { %7373 = vmatprep.subr.bf16.mxu0 %v7372_v21 }
 0xcfb   :  { %7375 = vmatpush3.bf16.msra.mxu0 %v7372_v21 }
 0xcfc   :  { %7377 = vmatprep.subr.bf16.mxu0 %v7376_v15 }
 0xcff   :  { %7379 = vmatpush3.bf16.msra.mxu0 %v7376_v15 }
 0xd00   :  { %7381 = vmatprep.subr.bf16.mxu0 %v7380_v12 }
 0xd03   :  { %7383 = vmatpush3.bf16.msra.mxu0 %v7380_v12 }
 0xd04   :  { %7385 = vmatprep.subr.bf16.mxu0 %v7384_v35 }
 0xd07   :  { %7387 = vmatpush3.bf16.msra.mxu0 %v7384_v35 }
 0xd08   :  { %7389 = vmatprep.subr.bf16.mxu0 %v7388_v49 }
 0xd0b   :  { %7391 = vmatpush3.bf16.msra.mxu0 %v7388_v49 }
 0xd0c   :  { %7393 = vmatprep.subr.bf16.mxu0 %v7392_v30 }
 0xd0f   :  { %7395 = vmatpush3.bf16.msra.mxu0 %v7392_v30 }
 0xdc9   :  { %v7201_v27 = vpop.f32.mrb[36].mxu0 }
 0xdca   :  { %v6344_v11 = vadd.f32 %v7201_v27, %v6766_v4  ;;  %v6338_v57 = vpop.f32.mrb[37].mxu0  ;;  %v6500_v27 = vld [vmem:[%s8736_s10 + $0x78] sm:$0xff] }
 0xdcb   :  { %v6339_v26 = vadd.f32 %v6766_v4, %v6338_v57  ;;  %v6499_v4 = vld [vmem:[%s8736_s10 + $0x70] sm:$0xff]  ;;  %v6771_v57 = vld [vmem:[%s8735_s9] ss:$0 sm:$0xff]  ;;  %s7587_s9 = smov [#allocation7]  }
 0xdcc   :  { %v6348_v5 = vadd.f32 %v7497_v58, %v6344_v11  ;;  %v7396_v11 = vpack.c.bf16 %v6500_v27, %v6499_v4  ;;  %s6633_s10 = sshll.u32 %s7587_s9, 4  ;;  %s6634_s10 = int_to_ptr.vmem [resolvable:$true] %s6633_s10 }
 0xdcd   :  { %v6347_v39 = vadd.f32 %v7498_v36, %v6339_v26  ;;  %s7543_s8 = scalar_lea.vmem %s6634_s10, 256  ;;  %p7548_p3 = scmp.lt.s32.totalorder %s6634_s10, %s6634_s10 }
 0xdce   :  { %v6352_v37 = vsel %vm129_vm0, %v6348_v5, 0.0  ;;  %7397 = vmatprep.subr.bf16.mxu0 %v7396_v11  ;;  %p7544_p2 = scmp.ne.s32.totalorder %s6634_s10, %s7543_s8  ;;  %p7549_p4 = scmp.lt.s32.totalorder %s7543_s8, %s7543_s8 }
 0xdcf   :  { %6353 = vadd.xlane.f32.xlu1 %v6352_v37  ;;  %v6349_v63 = vsel %vm129_vm0, %v6347_v39, 0.0  ;;  %7399 = vmatpush3.bf16.msra.mxu0 %v7396_v11 }
 0xdd0   :  { %6350 = vadd.xlane.f32.xlu0 %v6349_v63  ;;  %v6774_v63 = vld [vmem:[#allocation5 + $0xc] ss:$0 sm:$0xff]  ;;  %p7550_p5 = por %p7549_p4, %p7548_p3 }
 0xdd2   :  { %p7551_p6 = pnand %p7550_p5, %p7544_p2 }
 0xe5c   :  { %v6354_v40 = vpop.xlane.xlu1 %6353 }
 0xe5d   :  { %v6356_v1 = vmul.f32 0.03125, %v6354_v40  ;;  %v6351_v9 = vpop.xlane.xlu0 %6350 }
 0xe5e   :  { %v6355_v20 = vmul.f32 0.03125, %v6351_v9 }
 0xe5f   :  { %v8633_v2 = vsub.f32 %v6348_v5, %v6356_v1 }
 0xe60   :  { %v6357_v8 = vsub.f32 %v6347_v39, %v6355_v20 }
 0xe61   :  { %v6360_v52 = vmul.f32 %v8633_v2, %v8633_v2 }
 0xe62   :  { %v6359_v18 = vmul.f32 %v6357_v8, %v6357_v8 }
 0xe63   :  { %v6364_v55 = vsel %vm129_vm0, %v6360_v52, 0.0 }
 0xe64   :  { %v6361_v10 = vsel %vm129_vm0, %v6359_v18, 0.0 }
 0xe65   :  { %6362 = vadd.xlane.f32.xlu0 %v6361_v10 }
 0xe69   :  { %6365 = vadd.xlane.f32.xlu0 %v6364_v55 }
 0xef2   :  { %v6363_v50 = vpop.xlane.xlu0 %6362 }
 0xef3   :  { %v6367_v54 = vmul.f32 0.03125, %v6363_v50 }
 0xef5   :  { %v6369_v41 = vadd.f32 1e-05, %v6367_v54 }
 0xef6   :  { %v6366_v38 = vpop.xlane.xlu0 %6365 }
 0xef7   :  { %7485 = vrsqrt.f32 %v6369_v41  ;;  %v6368_v42 = vmul.f32 0.03125, %v6366_v38 }
 0xef9   :  { %v6370_v33 = vadd.f32 1e-05, %v6368_v42 }
 0xefb   :  { %7487 = vrsqrt.f32 %v6370_v33 }
 0xf01   :  { %v7486_v47 = vpop.eup %7485 }
 0xf02   :  { %v6373_v61 = vmul.f32 %v7486_v47, %v6357_v8 }
 0xf04   :  { %v6381_v62 = vmul.f32 %v6769_v0, %v6373_v61 }
 0xf05   :  { %v7488_v59 = vpop.eup %7487 }
 0xf06   :  { %v6374_v44 = vmul.f32 %v7488_v59, %v8633_v2  ;;  %v6389_v56 = vadd.f32 %v6770_v48, %v6381_v62 }
 0xf08   :  { %v6382_v3 = vmul.f32 %v6769_v0, %v6374_v44  ;;  %7210 = vmatprep.mubr.msk.f32.mxu1 %vm129_vm0, %v6389_v56 }
 0xf0a   :  { %v6390_v25 = vadd.f32 %v6770_v48, %v6382_v3 }
 0xf0c   :  { %7211 = vmatmul.mubr.msk.f32.vlgmr.msra.gmra.mrb[44].mxu1 %vm129_vm0, %v6390_v25 }
 0xfdf   :  { %v7212_v26 = vpop.f32.mrb[44].mxu1 }
 0xfe0   :  { %v6480_v58 = vadd.f32 %v7212_v26, %v6771_v57  ;;  %v6474_v5 = vpop.f32.mrb[45].mxu1 }
 0xfe1   :  { %v6475_v36 = vadd.f32 %v6771_v57, %v6474_v5 }
 0xfe2   :  { %v6484_v37 = vmax.f32 %v6480_v58, 0.0 }
 0xfe3   :  { %v6483_v39 = vmax.f32 %v6475_v36, 0.0 }
 0xfe5   :  { %7245 = vmatprep.mubr.f32.mxu0 %v6483_v39 }
 0xfe6   :  { %7246 = vmatmul.mubr.f32.vlgmr.msra.gmra.mrb[38].mxu0 %v6484_v37 }
0x10b9   :  { %v7247_v40 = vpop.f32.mrb[38].mxu0 }
0x10ba   :  { %v6579_v1 = vadd.f32 %v7247_v40, %v6774_v63  ;;  %v6573_v9 = vpop.f32.mrb[39].mxu0 }
0x10bb   :  { %v6574_v20 = vadd.f32 %v6774_v63, %v6573_v9 }
0x10bc   :  { %v6583_v2 = vadd.f32 %v6579_v1, %v6390_v25 }
0x10bd   :  { %v6582_v8 = vadd.f32 %v6574_v20, %v6389_v56 }
0x10be   :  { %v6587_v18 = vsel %vm129_vm0, %v6583_v2, 0.0 }
0x10bf   :  { %6588 = vadd.xlane.f32.xlu0 %v6587_v18  ;;  %v6584_v10 = vsel %vm129_vm0, %v6582_v8, 0.0 }
0x10c0   :  { %6585 = vadd.xlane.f32.xlu1 %v6584_v10 }
0x114c   :  { %v6589_v52 = vpop.xlane.xlu0 %6588 }
0x114d   :  { %v6591_v55 = vmul.f32 0.03125, %v6589_v52  ;;  %v6586_v7 = vpop.xlane.xlu1 %6585 }
0x114e   :  { %v6590_v34 = vmul.f32 0.03125, %v6586_v7 }
0x114f   :  { %v6593_v31 = vsub.f32 %v6583_v2, %v6591_v55 }
0x1150   :  { %v6592_v46 = vsub.f32 %v6582_v8, %v6590_v34 }
0x1151   :  { %v6595_v6 = vmul.f32 %v6593_v31, %v6593_v31 }
0x1152   :  { %v6594_v60 = vmul.f32 %v6592_v46, %v6592_v46 }
0x1153   :  { %v6599_v14 = vsel %vm129_vm0, %v6595_v6, 0.0 }
0x1154   :  { %6600 = vadd.xlane.f32.xlu0 %v6599_v14  ;;  %v6596_v16 = vsel %vm129_vm0, %v6594_v60, 0.0 }
0x1155   :  { %6597 = vadd.xlane.f32.xlu1 %v6596_v16 }
0x11e1   :  { %v6601_v17 = vpop.xlane.xlu0 %6600 }
0x11e2   :  { %v6603_v29 = vmul.f32 0.03125, %v6601_v17  ;;  %v6598_v19 = vpop.xlane.xlu1 %6597 }
0x11e3   :  { %v6602_v21 = vmul.f32 0.03125, %v6598_v19 }
0x11e4   :  { %v6605_v22 = vadd.f32 1e-05, %v6603_v29 }
0x11e5   :  { %v6604_v13 = vadd.f32 1e-05, %v6602_v21 }
0x11e6   :  { %7489 = vrsqrt.f32 %v6605_v22 }
0x11e7   :  { %7491 = vrsqrt.f32 %v6604_v13 }
0x11f0   :  { %v7490_v15 = vpop.eup %7489 }
0x11f1   :  { %v7492_v24 = vpop.eup %7491  ;;  %v6609_v12 = vmul.f32 %v7490_v15, %v6593_v31 }
0x11f2   :  { %v6608_v28 = vmul.f32 %v7492_v24, %v6592_v46 }
0x11f3   :  { %v6617_v35 = vmul.f32 %v6775_v23, %v6609_v12 }
0x11f4   :  { %v6616_v43 = vmul.f32 %v6775_v23, %v6608_v28 }
0x11f5   :  { %v6625_v45 = vadd.f32 %v6776_v32, %v6617_v35 }
0x11f6   :  { %v6624_v49 = vadd.f32 %v6776_v32, %v6616_v43 }
0x11f7   :  { %6627 = vst.msk [vmem:[#allocation7 + $0x8] sm:$0xff] %vm129_vm0, %v6625_v45 }
0x11f8   :  { %6626 = vst.msk [vmem:[#allocation7] sm:$0xff] %vm129_vm0, %v6624_v49 }
0x11f9   :  { %7554 = shalt.err (!%p7551_p6)
}
0x11fa   :  { %s7555_s3 = scalar_lea.hbm %s8737_s11, 256 }
0x11fb   :  { %p7556_p7 = scmp.ne.s32.totalorder %s8737_s11, %s7555_s3  ;;  %p7559_p8 = scmp.lt.u32.totalorder %s7555_s3, %s8737_s11 }
0x11fd   :  { %p7561_p9 = pnand %p7559_p8, %p7556_p7 }
0x11ff   :  { %7564 = shalt.err (!%p7561_p9)
}
0x1200   :  { %6639 = dma.vmem_to_hbm [thread:$0]  %s6634_s10, 256, %s8737_s11, [#allocation4], %s7572_s27, %s7572_s27, %s7573_s28  }
0x1201   :  { %7569 = dma.done.wait [#allocation4], 256  }
0x1202   :  { %7570 = vsyncadd [#allocation4], 4294967040 }
0x1203   :  { %6643 = vsyncpa [#allocation3], 1 }
0x1204   :  { %6644 = vsyncpa [#allocation6], 1 }
0x1205   :  { %6645 = vsyncpa [#allocation4], 1 }

</bundles_post_ra>
